<compile_context>
chip_gen: v7x
topology: tpu7x:2x2x1
jax: 0.10.0
libtpu: 0.0.40
codegen_flags: <defaults>
</compile_context>

<pallas_src>
import jax
import jax.numpy as jnp
from jax import lax
from jax.experimental import pallas as pl
from jax.experimental.pallas import tpu as pltpu

EPS = 1e-6                       # T5 layer-norm epsilon
VMEM_LIMIT = 48 * 1024 * 1024    # safe on v5e/v6e (128 MiB) and v7x (64 MiB)


# ---------------------------------------------------------------------------
# In-kernel helpers (traced inside the Pallas bodies, f32 math)
# ---------------------------------------------------------------------------
def _rmsnorm(x, w):
    # T5 "LayerNorm": no mean subtraction, no bias.
    var = jnp.mean(x * x, axis=-1, keepdims=True)
    return x * lax.rsqrt(var + EPS) * w


def _gelu_tanh(x):
    # T5 v1.1 / flan uses the tanh-approximate GELU ("gelu_new").
    c = 0.7978845608028654  # sqrt(2/pi)
    return 0.5 * x * (1.0 + jnp.tanh(c * (x + 0.044715 * x * x * x)))


# ---------------------------------------------------------------------------
# Kernel 1: fused (RMSNorm -> multi-head self-attention -> residual add)
# grid = (seq_tiles, num_heads); per-head weights come in via BlockSpec, the
# output projection is accumulated across the head axis (no lane slicing,
# no concatenate, no explicit transpose).
# ---------------------------------------------------------------------------
def attn_block_kernel(xq_ref, xf_ref, lnw_ref, wq_ref, wk_ref, wv_ref, wo_ref,
                      o_ref, xnq_ref, xnf_ref, acc_ref):
    h = pl.program_id(1)

    @pl.when(h == 0)
    def _init():
        # Cache RMSNorm'd activations (bf16) once per query tile.
        xnq_ref[...] = _rmsnorm(xq_ref[...], lnw_ref[...]).astype(jnp.bfloat16)
        xnf_ref[...] = _rmsnorm(xf_ref[...], lnw_ref[...]).astype(jnp.bfloat16)
        acc_ref[...] = jnp.zeros_like(acc_ref)

    wq = wq_ref[0]   # (D, hd) bf16
    wk = wk_ref[0]   # (D, hd) bf16
    wv = wv_ref[0]   # (D, hd) bf16
    wo = wo_ref[0]   # (hd, D) bf16

    q = jnp.dot(xnq_ref[...], wq, preferred_element_type=jnp.float32)  # (tq, hd)
    k = jnp.dot(xnf_ref[...], wk, preferred_element_type=jnp.float32)  # (S, hd)
    v = jnp.dot(xnf_ref[...], wv, preferred_element_type=jnp.float32)  # (S, hd)

    # Scores: contract head_dim on the last axes (no XLU transpose).
    # T5 attention has NO 1/sqrt(d) scaling (folded into weight init).
    s = lax.dot_general(q.astype(jnp.bfloat16), k.astype(jnp.bfloat16),
                        (((1,), (1,)), ((), ())),
                        preferred_element_type=jnp.float32)            # (tq, S)
    m = jnp.max(s, axis=-1, keepdims=True)
    e = jnp.exp(s - m)
    p = e * pl.reciprocal(jnp.sum(e, axis=-1, keepdims=True), approx=True)

    ctx = jnp.dot(p.astype(jnp.bfloat16), v.astype(jnp.bfloat16),
                  preferred_element_type=jnp.float32)                  # (tq, hd)
    acc_ref[...] += jnp.dot(ctx.astype(jnp.bfloat16), wo,
                            preferred_element_type=jnp.float32)        # (tq, D)

    @pl.when(h == pl.num_programs(1) - 1)
    def _fin():
        o_ref[...] = xq_ref[...] + acc_ref[...]


# ---------------------------------------------------------------------------
# Kernel 2: fused (RMSNorm -> gated-GELU FFN -> residual add)
# grid = (seq_tiles, d_ff_tiles); d_ff is a contraction axis with an f32
# accumulator; xn cached in scratch at the first d_ff tile.
# ---------------------------------------------------------------------------
def ffn_block_kernel(x_ref, lnw_ref, wi0_ref, wi1_ref, wo_ref, o_ref,
                     xn_ref, acc_ref):
    f = pl.program_id(1)

    @pl.when(f == 0)
    def _init():
        xn_ref[...] = _rmsnorm(x_ref[...], lnw_ref[...]).astype(jnp.bfloat16)
        acc_ref[...] = jnp.zeros_like(acc_ref)

    xn = xn_ref[...]
    g = _gelu_tanh(jnp.dot(xn, wi0_ref[...],
                           preferred_element_type=jnp.float32))
    lin = jnp.dot(xn, wi1_ref[...], preferred_element_type=jnp.float32)
    acc_ref[...] += jnp.dot((g * lin).astype(jnp.bfloat16), wo_ref[...],
                            preferred_element_type=jnp.float32)

    @pl.when(f == pl.num_programs(1) - 1)
    def _fin():
        o_ref[...] = x_ref[...] + acc_ref[...]


# ---------------------------------------------------------------------------
# Kernel 3: final RMSNorm + LM head, tiled over (seq, vocab); xn is computed
# once per seq tile (vocab tile j == 0) and cached in VMEM scratch.
# ---------------------------------------------------------------------------
def lm_head_kernel(x_ref, lnw_ref, w_ref, o_ref, xn_ref):
    j = pl.program_id(1)

    @pl.when(j == 0)
    def _init():
        xn_ref[...] = _rmsnorm(x_ref[...], lnw_ref[...]).astype(jnp.bfloat16)

    o_ref[...] = jnp.dot(xn_ref[...], w_ref[...],
                         preferred_element_type=jnp.float32)


# ---------------------------------------------------------------------------
# Python wrappers (pallas_call setup only)
# ---------------------------------------------------------------------------
def attn_block(x, lnw, wq_h, wk_h, wv_h, wo_h, *, ts=128):
    S, D = x.shape
    H, _, hd = wq_h.shape
    ts = min(ts, S)
    assert S % ts == 0
    return pl.pallas_call(
        attn_block_kernel,
        out_shape=jax.ShapeDtypeStruct((S, D), jnp.float32),
        grid=(S // ts, H),
        in_specs=[
            pl.BlockSpec((ts, D), lambda i, h: (i, 0)),        # query rows
            pl.BlockSpec((S, D), lambda i, h: (0, 0)),         # full seq (K/V)
            pl.BlockSpec((1, D), lambda i, h: (0, 0)),         # rmsnorm weight
            pl.BlockSpec((1, D, hd), lambda i, h: (h, 0, 0)),  # per-head Wq
            pl.BlockSpec((1, D, hd), lambda i, h: (h, 0, 0)),  # per-head Wk
            pl.BlockSpec((1, D, hd), lambda i, h: (h, 0, 0)),  # per-head Wv
            pl.BlockSpec((1, hd, D), lambda i, h: (h, 0, 0)),  # per-head Wo
        ],
        out_specs=pl.BlockSpec((ts, D), lambda i, h: (i, 0)),
        scratch_shapes=[
            pltpu.VMEM((ts, D), jnp.bfloat16),   # xn (query tile)
            pltpu.VMEM((S, D), jnp.bfloat16),    # xn (full seq, for K/V)
            pltpu.VMEM((ts, D), jnp.float32),    # output-projection accumulator
        ],
        compiler_params=pltpu.CompilerParams(
            dimension_semantics=("parallel", "arbitrary"),
            vmem_limit_bytes=VMEM_LIMIT),
    )(x, x, lnw, wq_h, wk_h, wv_h, wo_h)


def ffn_block(x, lnw, wi0, wi1, wo, *, ts=128, tf=512):
    S, D = x.shape
    F = wi0.shape[1]
    ts = min(ts, S)
    tf = min(tf, F)
    assert S % ts == 0 and F % tf == 0
    return pl.pallas_call(
        ffn_block_kernel,
        out_shape=jax.ShapeDtypeStruct((S, D), jnp.float32),
        grid=(S // ts, F // tf),
        in_specs=[
            pl.BlockSpec((ts, D), lambda i, f: (i, 0)),
            pl.BlockSpec((1, D), lambda i, f: (0, 0)),
            pl.BlockSpec((D, tf), lambda i, f: (0, f)),
            pl.BlockSpec((D, tf), lambda i, f: (0, f)),
            pl.BlockSpec((tf, D), lambda i, f: (f, 0)),
        ],
        out_specs=pl.BlockSpec((ts, D), lambda i, f: (i, 0)),
        scratch_shapes=[
            pltpu.VMEM((ts, D), jnp.bfloat16),   # cached xn
            pltpu.VMEM((ts, D), jnp.float32),    # d_ff accumulator
        ],
        compiler_params=pltpu.CompilerParams(
            dimension_semantics=("parallel", "arbitrary"),
            vmem_limit_bytes=VMEM_LIMIT),
    )(x, lnw, wi0, wi1, wo)


def lm_head(x, lnw, w, *, ts=128, tv=512):
    S, D = x.shape
    V = w.shape[1]
    ts = min(ts, S)
    tv = min(tv, V)
    assert S % ts == 0 and V % tv == 0
    return pl.pallas_call(
        lm_head_kernel,
        out_shape=jax.ShapeDtypeStruct((S, V), jnp.float32),
        grid=(S // ts, V // tv),
        in_specs=[
            pl.BlockSpec((ts, D), lambda i, j: (i, 0)),
            pl.BlockSpec((1, D), lambda i, j: (0, 0)),
            pl.BlockSpec((D, tv), lambda i, j: (0, j)),
        ],
        out_specs=pl.BlockSpec((ts, tv), lambda i, j: (i, j)),
        scratch_shapes=[pltpu.VMEM((ts, D), jnp.bfloat16)],   # cached xn
        compiler_params=pltpu.CompilerParams(
            # vocab axis must stay "arbitrary": the xn scratch is filled at
            # j == 0 and reused by later vocab tiles on the same core.
            dimension_semantics=("parallel", "arbitrary"),
            vmem_limit_bytes=VMEM_LIMIT),
    )(x, lnw, w)


# ---------------------------------------------------------------------------
# Deterministic synthetic "flan-t5-tiny" parameters (bf16 weights, f32 norms)
# ---------------------------------------------------------------------------
def init_params(key, *, vocab, d_model, d_ff, num_heads, head_dim):
    ks = jax.random.split(key, 9)
    s = d_model ** -0.5
    bf16 = jnp.bfloat16

    def head_major_in(k):
        # (D, D) column-sliced per head -> (H, D, hd)
        w = jax.random.normal(k, (d_model, d_model), jnp.float32) * s
        return (w.reshape(d_model, num_heads, head_dim)
                 .transpose(1, 0, 2).astype(bf16))

    def head_major_out(k):
        # (D, D) row-sliced per head -> (H, hd, D)
        w = jax.random.normal(k, (d_model, d_model), jnp.float32) * s
        return w.reshape(num_heads, head_dim, d_model).astype(bf16)

    return {
        "embed": jax.random.normal(ks[0], (vocab, d_model), jnp.float32) * s,
        "ln_attn": jnp.ones((1, d_model), jnp.float32),
        "wq": head_major_in(ks[1]),
        "wk": head_major_in(ks[2]),
        "wv": head_major_in(ks[3]),
        "wo": head_major_out(ks[4]),
        "ln_ffn": jnp.ones((1, d_model), jnp.float32),
        "wi0": (jax.random.normal(ks[5], (d_model, d_ff), jnp.float32)
                * s).astype(bf16),
        "wi1": (jax.random.normal(ks[6], (d_model, d_ff), jnp.float32)
                * s).astype(bf16),
        "wff_o": (jax.random.normal(ks[7], (d_ff, d_model), jnp.float32)
                  * d_ff ** -0.5).astype(bf16),
        "ln_final": jnp.ones((1, d_model), jnp.float32),
        "lm": (jax.random.normal(ks[8], (d_model, vocab), jnp.float32)
               * s).astype(bf16),
    }


def qa_forward(token_ids, params):
    # Embedding lookup is glue (plain JAX gather); residual stream stays f32.
    x = jnp.take(params["embed"], token_ids, axis=0)           # (S, D)
    x = attn_block(x, params["ln_attn"], params["wq"], params["wk"],
                   params["wv"], params["wo"])
    x = ffn_block(x, params["ln_ffn"], params["wi0"], params["wi1"],
                  params["wff_o"])
    logits = lm_head(x, params["ln_final"], params["lm"])      # (S, V)
    # Greedy "answer" token per position (stand-in for .generate()'s argmax).
    answer_ids = jnp.argmax(logits, axis=-1).astype(jnp.int32)
    return logits, answer_ids


if __name__ == "__main__":
    # Small but lane-aligned demo shapes (multiples of the (8,128) vreg tile).
    SEQ, D_MODEL, D_FF = 128, 128, 256
    NUM_HEADS, HEAD_DIM = 4, 32
    VOCAB = 1024

    key = jax.random.PRNGKey(0)
    k_tok, k_par = jax.random.split(key)
    params = init_params(k_par, vocab=VOCAB, d_model=D_MODEL, d_ff=D_FF,
                         num_heads=NUM_HEADS, head_dim=HEAD_DIM)

    # Synthetic "prompt" token ids (context + question already tokenized).
    token_ids = jax.random.randint(k_tok, (SEQ,), 0, VOCAB, dtype=jnp.int32)

    logits, answer_ids = qa_forward(token_ids, params)
    jax.block_until_ready((logits, answer_ids))

    assert logits.shape == (SEQ, VOCAB) and logits.dtype == jnp.float32
    assert answer_ids.shape == (SEQ,)
    print("KERNEL_OK")
</pallas_src>

<mosaic_0001>
module attributes {stable_mosaic.version = 11 : i64} {
  func.func @attn_block_kernel(%arg0: i32, %arg1: i32, %arg2: memref<128x128xf32, #tpu.memory_space<vmem>>, %arg3: memref<128x128xf32, #tpu.memory_space<vmem>>, %arg4: memref<1x128xf32, #tpu.memory_space<vmem>>, %arg5: memref<1x128x32xbf16, #tpu.memory_space<vmem>>, %arg6: memref<1x128x32xbf16, #tpu.memory_space<vmem>>, %arg7: memref<1x128x32xbf16, #tpu.memory_space<vmem>>, %arg8: memref<1x32x128xbf16, #tpu.memory_space<vmem>>, %arg9: memref<128x128xf32, #tpu.memory_space<vmem>>, %arg10: memref<128x128xbf16, #tpu.memory_space<vmem>>, %arg11: memref<128x128xbf16, #tpu.memory_space<vmem>>, %arg12: memref<128x128xf32, #tpu.memory_space<vmem>>) attributes {dimension_semantics = [#tpu.dimension_semantics<parallel>, #tpu.dimension_semantics<arbitrary>], iteration_bounds = array<i64: 1, 4>, scalar_prefetch = 0 : i64, scratch_operands = 3 : i64, tpu.core_type = #tpu.core_type<tc>, window_params = [{transform_indices = @transform_0, window_bounds = array<i64: 128, 128>}, {pipeline_mode = #tpu.pipeline_mode<synchronous>, transform_indices = @transform_1, window_bounds = array<i64: 128, 128>}, {pipeline_mode = #tpu.pipeline_mode<synchronous>, transform_indices = @transform_2, window_bounds = array<i64: 1, 128>}, {transform_indices = @transform_3, window_bounds = array<i64: 1, 128, 32>}, {transform_indices = @transform_4, window_bounds = array<i64: 1, 128, 32>}, {transform_indices = @transform_5, window_bounds = array<i64: 1, 128, 32>}, {transform_indices = @transform_6, window_bounds = array<i64: 1, 32, 128>}, {transform_indices = @transform_7, window_bounds = array<i64: 128, 128>}]} {
    %c0_i32 = arith.constant 0 : i32
    %0 = arith.cmpi eq, %arg1, %c0_i32 : i32
    %1 = arith.extui %0 : i1 to i32
    %c0_i32_0 = arith.constant 0 : i32
    %2 = arith.cmpi ne, %1, %c0_i32_0 : i32
    scf.if %2 {
      %c0_30 = arith.constant 0 : index
      %c0_31 = arith.constant 0 : index
      %41 = vector.load %arg2[%c0_30, %c0_31] : memref<128x128xf32, #tpu.memory_space<vmem>>, vector<128x128xf32>
      %c0_32 = arith.constant 0 : index
      %c0_33 = arith.constant 0 : index
      %42 = vector.load %arg4[%c0_32, %c0_33] : memref<1x128xf32, #tpu.memory_space<vmem>>, vector<1x128xf32>
      %43 = arith.mulf %41, %41 : vector<128x128xf32>
      %cst_34 = arith.constant dense<0.000000e+00> : vector<128xf32>
      %44 = vector.multi_reduction <add>, %43, %cst_34 [1] : vector<128x128xf32> to vector<128xf32>
      %45 = vector.shape_cast %44 : vector<128xf32> to vector<128x1xf32>
      %cst_35 = arith.constant 1.280000e+02 : f32
      %46 = vector.broadcast %cst_35 : f32 to vector<128x1xf32>
      %47 = arith.divf %45, %46 : vector<128x1xf32>
      %cst_36 = arith.constant 9.99999997E-7 : f32
      %48 = vector.broadcast %cst_36 : f32 to vector<128x1xf32>
      %49 = arith.addf %47, %48 : vector<128x1xf32>
      %50 = math.rsqrt %49 : vector<128x1xf32>
      %51 = vector.broadcast %50 : vector<128x1xf32> to vector<128x128xf32>
      %52 = arith.mulf %41, %51 : vector<128x128xf32>
      %53 = vector.broadcast %42 : vector<1x128xf32> to vector<128x128xf32>
      %54 = arith.mulf %52, %53 : vector<128x128xf32>
      %55 = arith.truncf %54 : vector<128x128xf32> to vector<128x128xbf16>
      %c0_37 = arith.constant 0 : index
      %c0_38 = arith.constant 0 : index
      %56 = vector.load %arg10[%c0_37, %c0_38] : memref<128x128xbf16, #tpu.memory_space<vmem>>, vector<128x128xbf16>
      tpu.vector_store %arg10[%c0_37, %c0_38], %55 {strides = array<i32>} : memref<128x128xbf16, #tpu.memory_space<vmem>>, vector<128x128xbf16>,
      %c0_39 = arith.constant 0 : index
      %c0_40 = arith.constant 0 : index
      %57 = vector.load %arg3[%c0_39, %c0_40] : memref<128x128xf32, #tpu.memory_space<vmem>>, vector<128x128xf32>
      %c0_41 = arith.constant 0 : index
      %c0_42 = arith.constant 0 : index
      %58 = vector.load %arg4[%c0_41, %c0_42] : memref<1x128xf32, #tpu.memory_space<vmem>>, vector<1x128xf32>
      %59 = arith.mulf %57, %57 : vector<128x128xf32>
      %cst_43 = arith.constant dense<0.000000e+00> : vector<128xf32>
      %60 = vector.multi_reduction <add>, %59, %cst_43 [1] : vector<128x128xf32> to vector<128xf32>
      %61 = vector.shape_cast %60 : vector<128xf32> to vector<128x1xf32>
      %cst_44 = arith.constant 1.280000e+02 : f32
      %62 = vector.broadcast %cst_44 : f32 to vector<128x1xf32>
      %63 = arith.divf %61, %62 : vector<128x1xf32>
      %cst_45 = arith.constant 9.99999997E-7 : f32
      %64 = vector.broadcast %cst_45 : f32 to vector<128x1xf32>
      %65 = arith.addf %63, %64 : vector<128x1xf32>
      %66 = math.rsqrt %65 : vector<128x1xf32>
      %67 = vector.broadcast %66 : vector<128x1xf32> to vector<128x128xf32>
      %68 = arith.mulf %57, %67 : vector<128x128xf32>
      %69 = vector.broadcast %58 : vector<1x128xf32> to vector<128x128xf32>
      %70 = arith.mulf %68, %69 : vector<128x128xf32>
      %71 = arith.truncf %70 : vector<128x128xf32> to vector<128x128xbf16>
      %c0_46 = arith.constant 0 : index
      %c0_47 = arith.constant 0 : index
      %72 = vector.load %arg11[%c0_46, %c0_47] : memref<128x128xbf16, #tpu.memory_space<vmem>>, vector<128x128xbf16>
      tpu.vector_store %arg11[%c0_46, %c0_47], %71 {strides = array<i32>} : memref<128x128xbf16, #tpu.memory_space<vmem>>, vector<128x128xbf16>,
      %cst_48 = arith.constant 0.000000e+00 : f32
      %73 = vector.broadcast %cst_48 : f32 to vector<128x128xf32>
      %c0_49 = arith.constant 0 : index
      %c0_50 = arith.constant 0 : index
      %74 = vector.load %arg12[%c0_49, %c0_50] : memref<128x128xf32, #tpu.memory_space<vmem>>, vector<128x128xf32>
      tpu.vector_store %arg12[%c0_49, %c0_50], %73 {strides = array<i32>} : memref<128x128xf32, #tpu.memory_space<vmem>>, vector<128x128xf32>,
    } else {
    }
    %c0 = arith.constant 0 : index
    %c0_1 = arith.constant 0 : index
    %c0_2 = arith.constant 0 : index
    %3 = vector.load %arg5[%c0, %c0_1, %c0_2] : memref<1x128x32xbf16, #tpu.memory_space<vmem>>, vector<1x128x32xbf16>
    %4 = vector.shape_cast %3 : vector<1x128x32xbf16> to vector<128x32xbf16>
    %c0_3 = arith.constant 0 : index
    %c0_4 = arith.constant 0 : index
    %c0_5 = arith.constant 0 : index
    %5 = vector.load %arg6[%c0_3, %c0_4, %c0_5] : memref<1x128x32xbf16, #tpu.memory_space<vmem>>, vector<1x128x32xbf16>
    %6 = vector.shape_cast %5 : vector<1x128x32xbf16> to vector<128x32xbf16>
    %c0_6 = arith.constant 0 : index
    %c0_7 = arith.constant 0 : index
    %c0_8 = arith.constant 0 : index
    %7 = vector.load %arg7[%c0_6, %c0_7, %c0_8] : memref<1x128x32xbf16, #tpu.memory_space<vmem>>, vector<1x128x32xbf16>
    %8 = vector.shape_cast %7 : vector<1x128x32xbf16> to vector<128x32xbf16>
    %c0_9 = arith.constant 0 : index
    %c0_10 = arith.constant 0 : index
    %c0_11 = arith.constant 0 : index
    %9 = vector.load %arg8[%c0_9, %c0_10, %c0_11] : memref<1x32x128xbf16, #tpu.memory_space<vmem>>, vector<1x32x128xbf16>
    %10 = vector.shape_cast %9 : vector<1x32x128xbf16> to vector<32x128xbf16>
    %c0_12 = arith.constant 0 : index
    %c0_13 = arith.constant 0 : index
    %11 = vector.load %arg10[%c0_12, %c0_13] : memref<128x128xbf16, #tpu.memory_space<vmem>>, vector<128x128xbf16>
    %cst = arith.constant dense<0.000000e+00> : vector<128x32xf32>
    %12 = tpu.matmul %11, %4, %cst {dimension_numbers = #tpu.dot_dimension_numbers<[1], [0], [0], [1], [0, 0, 1, 1], [], []>} : vector<128x128xbf16>, vector<128x32xbf16>, vector<128x32xf32> -> vector<128x32xf32>
    %c0_14 = arith.constant 0 : index
    %c0_15 = arith.constant 0 : index
    %13 = vector.load %arg11[%c0_14, %c0_15] : memref<128x128xbf16, #tpu.memory_space<vmem>>, vector<128x128xbf16>
    %cst_16 = arith.constant dense<0.000000e+00> : vector<128x32xf32>
    %14 = tpu.matmul %13, %6, %cst_16 {dimension_numbers = #tpu.dot_dimension_numbers<[1], [0], [0], [1], [0, 0, 1, 1], [], []>} : vector<128x128xbf16>, vector<128x32xbf16>, vector<128x32xf32> -> vector<128x32xf32>
    %c0_17 = arith.constant 0 : index
    %c0_18 = arith.constant 0 : index
    %15 = vector.load %arg11[%c0_17, %c0_18] : memref<128x128xbf16, #tpu.memory_space<vmem>>, vector<128x128xbf16>
    %cst_19 = arith.constant dense<0.000000e+00> : vector<128x32xf32>
    %16 = tpu.matmul %15, %8, %cst_19 {dimension_numbers = #tpu.dot_dimension_numbers<[1], [0], [0], [1], [0, 0, 1, 1], [], []>} : vector<128x128xbf16>, vector<128x32xbf16>, vector<128x32xf32> -> vector<128x32xf32>
    %17 = arith.truncf %12 : vector<128x32xf32> to vector<128x32xbf16>
    %18 = arith.truncf %14 : vector<128x32xf32> to vector<128x32xbf16>
    %cst_20 = arith.constant dense<0.000000e+00> : vector<128x128xf32>
    %19 = tpu.matmul %17, %18, %cst_20 {dimension_numbers = #tpu.dot_dimension_numbers<[1], [1], [0], [0], [0, 0, 1, 0], [], []>} : vector<128x32xbf16>, vector<128x32xbf16>, vector<128x128xf32> -> vector<128x128xf32>
    %cst_21 = arith.constant dense<0xFF800000> : vector<128xf32>
    %20 = vector.multi_reduction <maximumf>, %19, %cst_21 [1] : vector<128x128xf32> to vector<128xf32>
    %21 = vector.shape_cast %20 : vector<128xf32> to vector<128x1xf32>
    %22 = vector.broadcast %21 : vector<128x1xf32> to vector<128x128xf32>
    %23 = arith.subf %19, %22 : vector<128x128xf32>
    %24 = math.exp %23 : vector<128x128xf32>
    %cst_22 = arith.constant dense<0.000000e+00> : vector<128xf32>
    %25 = vector.multi_reduction <add>, %24, %cst_22 [1] : vector<128x128xf32> to vector<128xf32>
    %26 = vector.shape_cast %25 : vector<128xf32> to vector<128x1xf32>
    %27 = tpu.reciprocal %26 {approx = true} : vector<128x1xf32> -> vector<128x1xf32>
    %28 = vector.broadcast %27 : vector<128x1xf32> to vector<128x128xf32>
    %29 = arith.mulf %24, %28 : vector<128x128xf32>
    %30 = arith.truncf %29 : vector<128x128xf32> to vector<128x128xbf16>
    %31 = arith.truncf %16 : vector<128x32xf32> to vector<128x32xbf16>
    %cst_23 = arith.constant dense<0.000000e+00> : vector<128x32xf32>
    %32 = tpu.matmul %30, %31, %cst_23 {dimension_numbers = #tpu.dot_dimension_numbers<[1], [0], [0], [1], [0, 0, 1, 1], [], []>} : vector<128x128xbf16>, vector<128x32xbf16>, vector<128x32xf32> -> vector<128x32xf32>
    %c0_24 = arith.constant 0 : index
    %c0_25 = arith.constant 0 : index
    %33 = vector.load %arg12[%c0_24, %c0_25] : memref<128x128xf32, #tpu.memory_space<vmem>>, vector<128x128xf32>
    %34 = arith.truncf %32 : vector<128x32xf32> to vector<128x32xbf16>
    %cst_26 = arith.constant dense<0.000000e+00> : vector<128x128xf32>
    %35 = tpu.matmul %34, %10, %cst_26 {dimension_numbers = #tpu.dot_dimension_numbers<[1], [0], [0], [1], [0, 0, 1, 1], [], []>} : vector<128x32xbf16>, vector<32x128xbf16>, vector<128x128xf32> -> vector<128x128xf32>
    %36 = arith.addf %33, %35 : vector<128x128xf32>
    %c0_27 = arith.constant 0 : index
    %c0_28 = arith.constant 0 : index
    %37 = vector.load %arg12[%c0_27, %c0_28] : memref<128x128xf32, #tpu.memory_space<vmem>>, vector<128x128xf32>
    tpu.vector_store %arg12[%c0_27, %c0_28], %36 {strides = array<i32>} : memref<128x128xf32, #tpu.memory_space<vmem>>, vector<128x128xf32>,
    %c3_i32 = arith.constant 3 : i32
    %38 = arith.cmpi eq, %arg1, %c3_i32 : i32
    %39 = arith.extui %38 : i1 to i32
    %c0_i32_29 = arith.constant 0 : i32
    %40 = arith.cmpi ne, %39, %c0_i32_29 : i32
    scf.if %40 {
      %c0_30 = arith.constant 0 : index
      %c0_31 = arith.constant 0 : index
      %41 = vector.load %arg2[%c0_30, %c0_31] : memref<128x128xf32, #tpu.memory_space<vmem>>, vector<128x128xf32>
      %c0_32 = arith.constant 0 : index
      %c0_33 = arith.constant 0 : index
      %42 = vector.load %arg12[%c0_32, %c0_33] : memref<128x128xf32, #tpu.memory_space<vmem>>, vector<128x128xf32>
      %43 = arith.addf %41, %42 : vector<128x128xf32>
      %c0_34 = arith.constant 0 : index
      %c0_35 = arith.constant 0 : index
      %44 = vector.load %arg9[%c0_34, %c0_35] : memref<128x128xf32, #tpu.memory_space<vmem>>, vector<128x128xf32>
      tpu.vector_store %arg9[%c0_34, %c0_35], %43 {strides = array<i32>} : memref<128x128xf32, #tpu.memory_space<vmem>>, vector<128x128xf32>,
    } else {
    }
    return
  }
  func.func @transform_0(%arg0: i32, %arg1: i32) -> (i32, i32) {
    %c0_i32 = arith.constant 0 : i32
    %c0_i32_0 = arith.constant 0 : i32
    return %arg0, %c0_i32 : i32, i32
  }
  func.func @transform_1(%arg0: i32, %arg1: i32) -> (i32, i32) {
    %c0_i32 = arith.constant 0 : i32
    %c0_i32_0 = arith.constant 0 : i32
    %c0_i32_1 = arith.constant 0 : i32
    return %c0_i32, %c0_i32_0 : i32, i32
  }
  func.func @transform_2(%arg0: i32, %arg1: i32) -> (i32, i32) {
    %c0_i32 = arith.constant 0 : i32
    %c0_i32_0 = arith.constant 0 : i32
    %c0_i32_1 = arith.constant 0 : i32
    return %c0_i32, %c0_i32_0 : i32, i32
  }
  func.func @transform_3(%arg0: i32, %arg1: i32) -> (i32, i32, i32) {
    %c0_i32 = arith.constant 0 : i32
    %c0_i32_0 = arith.constant 0 : i32
    %c0_i32_1 = arith.constant 0 : i32
    return %arg1, %c0_i32, %c0_i32_0 : i32, i32, i32
  }
  func.func @transform_4(%arg0: i32, %arg1: i32) -> (i32, i32, i32) {
    %c0_i32 = arith.constant 0 : i32
    %c0_i32_0 = arith.constant 0 : i32
    %c0_i32_1 = arith.constant 0 : i32
    return %arg1, %c0_i32, %c0_i32_0 : i32, i32, i32
  }
  func.func @transform_5(%arg0: i32, %arg1: i32) -> (i32, i32, i32) {
    %c0_i32 = arith.constant 0 : i32
    %c0_i32_0 = arith.constant 0 : i32
    %c0_i32_1 = arith.constant 0 : i32
    return %arg1, %c0_i32, %c0_i32_0 : i32, i32, i32
  }
  func.func @transform_6(%arg0: i32, %arg1: i32) -> (i32, i32, i32) {
    %c0_i32 = arith.constant 0 : i32
    %c0_i32_0 = arith.constant 0 : i32
    %c0_i32_1 = arith.constant 0 : i32
    return %arg1, %c0_i32, %c0_i32_0 : i32, i32, i32
  }
  func.func @transform_7(%arg0: i32, %arg1: i32) -> (i32, i32) {
    %c0_i32 = arith.constant 0 : i32
    %c0_i32_0 = arith.constant 0 : i32
    return %arg0, %c0_i32 : i32, i32
  }
}

</mosaic_0001>

<bundles_post_ra>
// kernel: tpu_custom_call.1
= control target key start
LH: loop header
LB: loop body
LE: loop exit
PB: predicated region body
PF: predicated region fallthrough
CT: control target
= control target key end

     0   :  { %12 = vsyncpa [#allocation6], 0  ;;  %s2660_s24 = smov 0   ;;  %s2662_s25 = smov 0   ;;  %s3277_s0 = inlined_call_operand.vmem [shape: f32[128,128], index: 0, kind: input, shape index: {}]   ;;  %s3278_s1 = inlined_call_operand.vmem [shape: f32[128,128], index: 1, kind: input, shape index: {}]   ;;  %s3279_s2 = inlined_call_operand.vmem [shape: f32[1,128], index: 2, kind: input, shape index: {}]   ;;  %s3280_s3 = inlined_call_operand.vmem [shape: bf16[4,128,32], index: 3, kind: input, shape index: {}]   ;;  %s3281_s4 = inlined_call_operand.vmem [shape: bf16[4,128,32], index: 4, kind: input, shape index: {}]   ;;  %s3282_s5 = inlined_call_operand.vmem [shape: bf16[4,128,32], index: 5, kind: input, shape index: {}]   ;;  %s3283_s6 = inlined_call_operand.vmem [shape: bf16[4,32,128], index: 6, kind: input, shape index: {}]   ;;  %s3284_s7 = inlined_call_operand.hbm [shape: f32[128,128], index: 7, kind: output, shape index: {}]  }
   0x1   :  { %s2664_s26 = smov 0  }
   0x2 LB: > { %s2013_s27 = sadd.s32 4294967295, %s2614_s26   ;;  %s27_s28 = sadd.s32 1, %s2610_s25  ;;  %s2614_s26 = sphi %s2664_s26, %s18_s26   ;;  %s2610_s25 = sphi %s2662_s25, %s3287_s25   ;;  %s2606_s24 = sphi %s2660_s24, %s3286_s24  }
   0x3   : > { %p28_p0 = scmp.ge.s32.totalorder %s27_s28, 4  ;;  %p2017_p1 = scmp.ge.s32.totalorder %s2614_s26, 1 }
   0x4   : > { %p291_p2 = scmp.lt.s32.totalorder %s2614_s26, 5 }
   0x5   : > { %s3289_s28 = smov (%p28_p0, %s27_s28), 0 }
   0x6   : > { %p292_p3 = pnand %p2017_p1, %p291_p2 }
   0x7   : > { %p344_p4 = scmp.lt.s32.totalorder (!%p292_p3), %s2606_s24, 3  ;;  %p2026_p5 = scmp.ne.s32.totalorder (!%p292_p3), %s2606_s24, 0 }
   0x8   : > { %295 = sbr.rel (%p292_p3) target bundleno = 1589 (0x635), region = 48 }
   0xf   : > { %s345_s29 = scalar_select %p344_p4, %s2606_s24, 3 }
  0x10   : > { %369 = sbr.rel (%p2026_p5) target bundleno = 244 (0xf4), region = 52  ;;  %v2707_v0 = vld [vmem:[%s3277_s0 + $0x10] sm:$0xff] (!%p2026_p5)  ;;  %v2712_v1 = vld [vmem:[%s3277_s0] sm:$0xff] (!%p2026_p5)  ;;  %v2717_v2 = vld [vmem:[%s3277_s0 + $0x18] sm:$0xff] (!%p2026_p5) }
  0x11   : > { %s2076_s30 = sshll.u32 %s345_s29, 6  ;;  %s2079_s8 = sshll.u32 %s345_s29, 4  ;;  %v389_v3 = vmul.f32 (!%p2026_p5), %v2707_v0, %v2707_v0  ;;  %v387_v4 = vmul.f32 (!%p2026_p5), %v2712_v1, %v2712_v1  ;;  %v2726_v5 = vld [vmem:[%s3277_s0 + $0x8] sm:$0xff] (!%p2026_p5)  ;;  %v390_v6 = vmul.f32 (!%p2026_p5), %v2717_v2, %v2717_v2  ;;  %v2740_v9 = vld [vmem:[%s3277_s0 + $0x20] sm:$0xff] (!%p2026_p5)  ;;  %v2749_v12 = vld [vmem:[%s3277_s0 + $0x38] sm:$0xff] (!%p2026_p5) }
  0x12   : > { %s2686_s11 = scalar_lea.vmem %s3280_s3, %s2076_s30  ;;  %s2691_s14 = scalar_lea.vmem %s3281_s4, %s2076_s30  ;;  %v388_v7 = vmul.f32 (!%p2026_p5), %v2726_v5, %v2726_v5  ;;  %v2735_v8 = vld [vmem:[%s3277_s0 + $0x28] sm:$0xff] (!%p2026_p5)  ;;  %v391_v11 = vmul.f32 (!%p2026_p5), %v2740_v9, %v2740_v9  ;;  %v2754_v13 = vld [vmem:[%s3277_s0 + $0x30] sm:$0xff] (!%p2026_p5)  ;;  %v394_v14 = vmul.f32 (!%p2026_p5), %v2749_v12, %v2749_v12  ;;  %v2768_v17 = vld [vmem:[%s3277_s0 + $0x40] sm:$0xff] (!%p2026_p5) }
  0x13   : > { %s2696_s17 = scalar_lea.vmem %s3282_s5, %s2076_s30  ;;  %s2701_s20 = scalar_lea.vmem %s3283_s6, %s2079_s8  ;;  %407 = vadd.xlane.f32.xlu1 (!%p2026_p5), %v389_v3  ;;  %403 = vadd.xlane.f32.xlu0 (!%p2026_p5), %v387_v4  ;;  %v392_v10 = vmul.f32 (!%p2026_p5), %v2735_v8, %v2735_v8  ;;  %v393_v15 = vmul.f32 (!%p2026_p5), %v2754_v13, %v2754_v13  ;;  %v2763_v16 = vld [vmem:[%s3277_s0 + $0x48] sm:$0xff] (!%p2026_p5)  ;;  %v395_v19 = vmul.f32 (!%p2026_p5), %v2768_v17, %v2768_v17  ;;  %v2777_v20 = vld [vmem:[%s3277_s0 + $0x58] sm:$0xff] (!%p2026_p5)  ;;  %v2782_v21 = vld [vmem:[%s3277_s0 + $0x50] sm:$0xff] (!%p2026_p5)  ;;  %v2616_v3 = vmov (!%p2026_p5), 0.0  }
  0x14   : > { %v396_v18 = vmul.f32 (!%p2026_p5), %v2763_v16, %v2763_v16  ;;  %v398_v22 = vmul.f32 (!%p2026_p5), %v2777_v20, %v2777_v20  ;;  %v397_v23 = vmul.f32 (!%p2026_p5), %v2782_v21, %v2782_v21  ;;  %v2791_v24 = vld [vmem:[%s3277_s0 + $0x68] sm:$0xff] (!%p2026_p5)  ;;  %v2796_v25 = vld [vmem:[%s3277_s0 + $0x60] sm:$0xff] (!%p2026_p5)  ;;  %v2805_v28 = vld [vmem:[%s3277_s0 + $0x78] sm:$0xff] (!%p2026_p5)  ;;  %705 = vst [vmem:[#allocation4] sm:$0xff] (!%p2026_p5), %v2616_v3 }
  0x15   : > { %v400_v26 = vmul.f32 (!%p2026_p5), %v2791_v24, %v2791_v24  ;;  %v399_v27 = vmul.f32 (!%p2026_p5), %v2796_v25, %v2796_v25  ;;  %v2810_v29 = vld [vmem:[%s3277_s0 + $0x70] sm:$0xff] (!%p2026_p5)  ;;  %v402_v30 = vmul.f32 (!%p2026_p5), %v2805_v28, %v2805_v28  ;;  %v2819_v32 = vld [vmem:[%s3278_s1 + $0x8] sm:$0xff] (!%p2026_p5)  ;;  %v2824_v33 = vld [vmem:[%s3278_s1] sm:$0xff] (!%p2026_p5)  ;;  %706 = vst [vmem:[#allocation4 + $0x8] sm:$0xff] (!%p2026_p5), %v2616_v3 }
  0x16   : > { %v401_v31 = vmul.f32 (!%p2026_p5), %v2810_v29, %v2810_v29  ;;  %v556_v34 = vmul.f32 (!%p2026_p5), %v2819_v32, %v2819_v32  ;;  %v555_v35 = vmul.f32 (!%p2026_p5), %v2824_v33, %v2824_v33  ;;  %v2833_v36 = vld [vmem:[%s3278_s1 + $0x18] sm:$0xff] (!%p2026_p5)  ;;  %v2838_v37 = vld [vmem:[%s3278_s1 + $0x10] sm:$0xff] (!%p2026_p5)  ;;  %v2847_v40 = vld [vmem:[%s3278_s1 + $0x28] sm:$0xff] (!%p2026_p5)  ;;  %707 = vst [vmem:[#allocation4 + $0x10] sm:$0xff] (!%p2026_p5), %v2616_v3 }
  0x17   : > { %409 = vadd.xlane.f32.xlu1 %v390_v6  ;;  %405 = vadd.xlane.f32.xlu0 %v388_v7  ;;  %v558_v38 = vmul.f32 %v2833_v36, %v2833_v36  ;;  %v557_v39 = vmul.f32 %v2838_v37, %v2838_v37  ;;  %v2852_v41 = vld [vmem:[%s3278_s1 + $0x20] sm:$0xff]  ;;  %v560_v42 = vmul.f32 %v2847_v40, %v2847_v40  ;;  %v2861_v44 = vld [vmem:[%s3278_s1 + $0x38] sm:$0xff]  ;;  %v2866_v45 = vld [vmem:[%s3278_s1 + $0x30] sm:$0xff] }
  0x18   : > { %v559_v43 = vmul.f32 %v2852_v41, %v2852_v41  ;;  %v562_v46 = vmul.f32 %v2861_v44, %v2861_v44  ;;  %v561_v47 = vmul.f32 %v2866_v45, %v2866_v45  ;;  %v2875_v48 = vld [vmem:[%s3278_s1 + $0x48] sm:$0xff]  ;;  %v2880_v49 = vld [vmem:[%s3278_s1 + $0x40] sm:$0xff]  ;;  %v2889_v52 = vld [vmem:[%s3278_s1 + $0x58] sm:$0xff]  ;;  %708 = vst [vmem:[#allocation4 + $0x18] sm:$0xff] %v2616_v3 }
  0x19   : > { %v564_v50 = vmul.f32 %v2875_v48, %v2875_v48  ;;  %v563_v51 = vmul.f32 %v2880_v49, %v2880_v49  ;;  %v2894_v53 = vld [vmem:[%s3278_s1 + $0x50] sm:$0xff]  ;;  %v566_v54 = vmul.f32 %v2889_v52, %v2889_v52  ;;  %v2903_v56 = vld [vmem:[%s3278_s1 + $0x68] sm:$0xff]  ;;  %v2908_v57 = vld [vmem:[%s3278_s1 + $0x60] sm:$0xff]  ;;  %709 = vst [vmem:[#allocation4 + $0x20] sm:$0xff] %v2616_v3 }
  0x1a   : > { %v565_v55 = vmul.f32 %v2894_v53, %v2894_v53  ;;  %v568_v58 = vmul.f32 %v2903_v56, %v2903_v56  ;;  %v567_v59 = vmul.f32 %v2908_v57, %v2908_v57  ;;  %v2917_v60 = vld [vmem:[%s3278_s1 + $0x78] sm:$0xff]  ;;  %v2922_v61 = vld [vmem:[%s3278_s1 + $0x70] sm:$0xff]  ;;  %710 = vst [vmem:[#allocation4 + $0x28] sm:$0xff] %v2616_v3  ;;  %711 = vst [vmem:[#allocation4 + $0x30] sm:$0xff] %v2616_v3 }
  0x1b   : > { %413 = vadd.xlane.f32.xlu1 %v392_v10  ;;  %411 = vadd.xlane.f32.xlu0 %v391_v11  ;;  %v570_v62 = vmul.f32 %v2917_v60, %v2917_v60  ;;  %v569_v63 = vmul.f32 %v2922_v61, %v2922_v61  ;;  %712 = vst [vmem:[#allocation4 + $0x38] sm:$0xff] %v2616_v3  ;;  %713 = vst [vmem:[#allocation4 + $0x40] sm:$0xff] %v2616_v3 }
  0x1c   : > { %714 = vst [vmem:[#allocation4 + $0x48] sm:$0xff] %v2616_v3  ;;  %715 = vst [vmem:[#allocation4 + $0x50] sm:$0xff] %v2616_v3 }
  0x1d   : > { %716 = vst [vmem:[#allocation4 + $0x58] sm:$0xff] %v2616_v3  ;;  %717 = vst [vmem:[#allocation4 + $0x60] sm:$0xff] %v2616_v3 }
  0x1e   : > { %718 = vst [vmem:[#allocation4 + $0x68] sm:$0xff] %v2616_v3  ;;  %719 = vst [vmem:[#allocation4 + $0x70] sm:$0xff] %v2616_v3 }
  0x1f   : > { %417 = vadd.xlane.f32.xlu1 %v394_v14  ;;  %415 = vadd.xlane.f32.xlu0 %v393_v15  ;;  %720 = vst [vmem:[#allocation4 + $0x78] sm:$0xff] %v2616_v3 }
  0x23   : > { %421 = vadd.xlane.f32.xlu1 %v396_v18  ;;  %419 = vadd.xlane.f32.xlu0 %v395_v19 }
  0x27   : > { %425 = vadd.xlane.f32.xlu1 %v398_v22  ;;  %423 = vadd.xlane.f32.xlu0 %v397_v23 }
  0x2b   : > { %429 = vadd.xlane.f32.xlu1 %v400_v26  ;;  %427 = vadd.xlane.f32.xlu0 %v399_v27 }
  0x2f   : > { %433 = vadd.xlane.f32.xlu1 %v402_v30  ;;  %431 = vadd.xlane.f32.xlu0 %v401_v31 }
  0x33   : > { %573 = vadd.xlane.f32.xlu1 %v556_v34  ;;  %571 = vadd.xlane.f32.xlu0 %v555_v35 }
  0x37   : > { %577 = vadd.xlane.f32.xlu1 %v558_v38  ;;  %575 = vadd.xlane.f32.xlu0 %v557_v39 }
  0x3b   : > { %581 = vadd.xlane.f32.xlu1 %v560_v42  ;;  %579 = vadd.xlane.f32.xlu0 %v559_v43 }
  0x3f   : > { %585 = vadd.xlane.f32.xlu1 %v562_v46  ;;  %583 = vadd.xlane.f32.xlu0 %v561_v47 }
  0x43   : > { %589 = vadd.xlane.f32.xlu1 %v564_v50  ;;  %587 = vadd.xlane.f32.xlu0 %v563_v51 }
  0x47   : > { %593 = vadd.xlane.f32.xlu1 %v566_v54  ;;  %591 = vadd.xlane.f32.xlu0 %v565_v55 }
  0x4b   : > { %597 = vadd.xlane.f32.xlu1 %v568_v58  ;;  %595 = vadd.xlane.f32.xlu0 %v567_v59 }
  0x4f   : > { %601 = vadd.xlane.f32.xlu1 %v570_v62  ;;  %599 = vadd.xlane.f32.xlu0 %v569_v63 }
  0xa0   : > { %v408_v4 = vpop.xlane.xlu1 %407  ;;  %v404_v6 = vpop.xlane.xlu0 %403 }
  0xa1   : > { %v438_v7 = vmul.f32 0.0078125, %v408_v4  ;;  %v436_v10 = vmul.f32 0.0078125, %v404_v6  ;;  %v2932_v4 = vld [vmem:[%s3279_s2] ss:$0 sm:$0xff] }
  0xa3   : > { %v454_v11 = vadd.f32 1e-06, %v438_v7  ;;  %v452_v14 = vadd.f32 1e-06, %v436_v10 }
  0xa4   : > { %v410_v15 = vpop.xlane.xlu1 %409  ;;  %v406_v18 = vpop.xlane.xlu0 %405 }
  0xa5   : > { %2408 = vrsqrt.f32 %v454_v11  ;;  %v439_v19 = vmul.f32 0.0078125, %v410_v15  ;;  %v437_v22 = vmul.f32 0.0078125, %v406_v18 }
  0xa6   : > { %2410 = vrsqrt.f32 %v452_v14 }
  0xa7   : > { %v455_v23 = vadd.f32 1e-06, %v439_v19  ;;  %v453_v26 = vadd.f32 1e-06, %v437_v22 }
  0xa8   : > { %v414_v27 = vpop.xlane.xlu1 %413  ;;  %v412_v30 = vpop.xlane.xlu0 %411 }
  0xa9   : > { %2412 = vrsqrt.f32 %v455_v23  ;;  %v441_v31 = vmul.f32 0.0078125, %v414_v27  ;;  %v440_v34 = vmul.f32 0.0078125, %v412_v30 }
  0xaa   : > { %2414 = vrsqrt.f32 %v453_v26 }
  0xab   : > { %v457_v35 = vadd.f32 1e-06, %v441_v31  ;;  %v456_v38 = vadd.f32 1e-06, %v440_v34 }
  0xac   : > { %v418_v39 = vpop.xlane.xlu1 %417  ;;  %v416_v42 = vpop.xlane.xlu0 %415 }
  0xad   : > { %2416 = vrsqrt.f32 %v457_v35  ;;  %v443_v43 = vmul.f32 0.0078125, %v418_v39  ;;  %v442_v46 = vmul.f32 0.0078125, %v416_v42 }
  0xae   : > { %2418 = vrsqrt.f32 %v456_v38 }
  0xaf   : > { %v2409_v47 = vpop.eup %2408  ;;  %v459_v50 = vadd.f32 1e-06, %v443_v43  ;;  %v458_v51 = vadd.f32 1e-06, %v442_v46 }
  0xb0   : > { %v2411_v54 = vpop.eup %2410  ;;  %v422_v55 = vpop.xlane.xlu1 %421  ;;  %v486_v63 = vmul.f32 %v2409_v47, %v2707_v0 }
  0xb1   : > { %v420_v58 = vpop.xlane.xlu0 %419  ;;  %2420 = vrsqrt.f32 %v459_v50  ;;  %v445_v59 = vmul.f32 0.0078125, %v422_v55  ;;  %v484_v6 = vmul.f32 %v2411_v54, %v2712_v1 }
  0xb2   : > { %v444_v62 = vmul.f32 0.0078125, %v420_v58  ;;  %2422 = vrsqrt.f32 %v458_v51  ;;  %v508_v23 = vmul.f32 %v2932_v4, %v486_v63 }
  0xb3   : > { %v2413_v3 = vpop.eup %2412  ;;  %v461_v7 = vadd.f32 1e-06, %v445_v59  ;;  %v506_v1 = vmul.f32 %v2932_v4, %v484_v6 }
  0xb4   : > { %v460_v10 = vadd.f32 1e-06, %v444_v62  ;;  %v2415_v11 = vpop.eup %2414  ;;  %v487_v14 = vmul.f32 %v2413_v3, %v2717_v2  ;;  %v426_v15 = vpop.xlane.xlu1 %425 }
  0xb5   : > { %v424_v18 = vpop.xlane.xlu0 %423  ;;  %v485_v19 = vmul.f32 %v2415_v11, %v2726_v5  ;;  %2424 = vrsqrt.f32 %v461_v7  ;;  %v447_v0 = vmul.f32 0.0078125, %v426_v15 }
  0xb6   : > { %v446_v22 = vmul.f32 0.0078125, %v424_v18  ;;  %v509_v26 = vmul.f32 %v2932_v4, %v487_v14  ;;  %2426 = vrsqrt.f32 %v460_v10 }
  0xb7   : > { %v2417_v27 = vpop.eup %2416  ;;  %v507_v30 = vmul.f32 %v2932_v4, %v485_v19  ;;  %v463_v31 = vadd.f32 1e-06, %v447_v0 }
  0xb8   : > { %v462_v34 = vadd.f32 1e-06, %v446_v22  ;;  %v2419_v2 = vpop.eup %2418  ;;  %v523_v35 = vpack.c.bf16 %v509_v26, %v508_v23  ;;  %v489_v38 = vmul.f32 %v2417_v27, %v2735_v8  ;;  %v430_v5 = vpop.xlane.xlu1 %429 }
  0xb9   : > { %v428_v39 = vpop.xlane.xlu0 %427  ;;  %v522_v42 = vpack.c.bf16 %v507_v30, %v506_v1  ;;  %v488_v43 = vmul.f32 %v2419_v2, %v2740_v9  ;;  %2428 = vrsqrt.f32 %v463_v31  ;;  %v449_v46 = vmul.f32 0.0078125, %v430_v5 }
  0xba   : > { %531 = vst [vmem:[#allocation2 + $0x8] sm:$0xff] %v523_v35  ;;  %v511_v47 = vmul.f32 %v2932_v4, %v489_v38  ;;  %2430 = vrsqrt.f32 %v462_v34  ;;  %v448_v50 = vmul.f32 0.0078125, %v428_v39 }
  0xbb   : > { %v2421_v51 = vpop.eup %2420  ;;  %530 = vst [vmem:[#allocation2] sm:$0xff] %v522_v42  ;;  %v510_v54 = vmul.f32 %v2932_v4, %v488_v43  ;;  %v465_v55 = vadd.f32 1e-06, %v449_v46 }
  0xbc   : > { %v2423_v58 = vpop.eup %2422  ;;  %v491_v8 = vmul.f32 %v2421_v51, %v2749_v12  ;;  %v464_v59 = vadd.f32 1e-06, %v448_v50  ;;  %v434_v62 = vpop.xlane.xlu1 %433 }
  0xbd   : > { %v432_v63 = vpop.xlane.xlu0 %431  ;;  %v524_v3 = vpack.c.bf16 %v511_v47, %v510_v54  ;;  %v490_v9 = vmul.f32 %v2423_v58, %v2754_v13  ;;  %2432 = vrsqrt.f32 %v465_v55  ;;  %v451_v6 = vmul.f32 0.0078125, %v434_v62 }
  0xbe   : > { %v513_v7 = vmul.f32 %v2932_v4, %v491_v8  ;;  %2434 = vrsqrt.f32 %v464_v59  ;;  %v450_v10 = vmul.f32 0.0078125, %v432_v63 }
  0xbf   : > { %v2425_v11 = vpop.eup %2424  ;;  %532 = vst [vmem:[#allocation2 + $0x10] sm:$0xff] %v524_v3  ;;  %v512_v14 = vmul.f32 %v2932_v4, %v490_v9  ;;  %v467_v15 = vadd.f32 1e-06, %v451_v6 }
  0xc0   : > { %v2427_v18 = vpop.eup %2426  ;;  %v493_v12 = vmul.f32 %v2425_v11, %v2763_v16  ;;  %v466_v19 = vadd.f32 1e-06, %v450_v10  ;;  %v574_v0 = vpop.xlane.xlu1 %573 }
  0xc1   : > { %v572_v22 = vpop.xlane.xlu0 %571  ;;  %v525_v23 = vpack.c.bf16 %v513_v7, %v512_v14  ;;  %v492_v13 = vmul.f32 %v2427_v18, %v2768_v17  ;;  %2436 = vrsqrt.f32 %v467_v15  ;;  %v604_v26 = vmul.f32 0.0078125, %v574_v0 }
  0xc2   : > { %v515_v27 = vmul.f32 %v2932_v4, %v493_v12  ;;  %2438 = vrsqrt.f32 %v466_v19  ;;  %v603_v1 = vmul.f32 0.0078125, %v572_v22 }
  0xc3   : > { %v2429_v30 = vpop.eup %2428  ;;  %533 = vst [vmem:[#allocation2 + $0x18] sm:$0xff] %v525_v23  ;;  %v514_v31 = vmul.f32 %v2932_v4, %v492_v13  ;;  %v620_v34 = vadd.f32 1e-06, %v604_v26 }
  0xc4   : > { %v2431_v2 = vpop.eup %2430  ;;  %v495_v16 = vmul.f32 %v2429_v30, %v2777_v20  ;;  %v619_v35 = vadd.f32 1e-06, %v603_v1  ;;  %v578_v38 = vpop.xlane.xlu1 %577 }
  0xc5   : > { %v576_v5 = vpop.xlane.xlu0 %575  ;;  %v526_v39 = vpack.c.bf16 %v515_v27, %v514_v31  ;;  %v494_v17 = vmul.f32 %v2431_v2, %v2782_v21  ;;  %2440 = vrsqrt.f32 %v620_v34  ;;  %v606_v42 = vmul.f32 0.0078125, %v578_v38 }
  0xc6   : > { %v517_v43 = vmul.f32 %v2932_v4, %v495_v16  ;;  %2442 = vrsqrt.f32 %v619_v35  ;;  %v605_v46 = vmul.f32 0.0078125, %v576_v5 }
  0xc7   : > { %v2433_v47 = vpop.eup %2432  ;;  %534 = vst [vmem:[#allocation2 + $0x20] sm:$0xff] %v526_v39  ;;  %v516_v50 = vmul.f32 %v2932_v4, %v494_v17  ;;  %v622_v51 = vadd.f32 1e-06, %v606_v42 }
  0xc8   : > { %v2435_v54 = vpop.eup %2434  ;;  %v497_v20 = vmul.f32 %v2433_v47, %v2791_v24  ;;  %v621_v55 = vadd.f32 1e-06, %v605_v46  ;;  %v582_v58 = vpop.xlane.xlu1 %581 }
  0xc9   : > { %v580_v8 = vpop.xlane.xlu0 %579  ;;  %v527_v59 = vpack.c.bf16 %v517_v43, %v516_v50  ;;  %v496_v21 = vmul.f32 %v2435_v54, %v2796_v25  ;;  %2444 = vrsqrt.f32 %v622_v51  ;;  %v608_v62 = vmul.f32 0.0078125, %v582_v58 }
  0xca   : > { %v519_v63 = vmul.f32 %v2932_v4, %v497_v20  ;;  %2446 = vrsqrt.f32 %v621_v55  ;;  %v607_v3 = vmul.f32 0.0078125, %v580_v8 }
  0xcb   : > { %v2437_v9 = vpop.eup %2436  ;;  %535 = vst [vmem:[#allocation2 + $0x28] sm:$0xff] %v527_v59  ;;  %v518_v6 = vmul.f32 %v2932_v4, %v496_v21  ;;  %v624_v7 = vadd.f32 1e-06, %v608_v62 }
  0xcc   : > { %v2439_v10 = vpop.eup %2438  ;;  %v499_v24 = vmul.f32 %v2437_v9, %v2805_v28  ;;  %v623_v11 = vadd.f32 1e-06, %v607_v3  ;;  %v586_v14 = vpop.xlane.xlu1 %585 }
  0xcd   : > { %v584_v15 = vpop.xlane.xlu0 %583  ;;  %v528_v18 = vpack.c.bf16 %v519_v63, %v518_v6  ;;  %v498_v25 = vmul.f32 %v2439_v10, %v2810_v29  ;;  %2448 = vrsqrt.f32 %v624_v7  ;;  %v610_v12 = vmul.f32 0.0078125, %v586_v14 }
  0xce   : > { %v521_v19 = vmul.f32 %v2932_v4, %v499_v24  ;;  %2450 = vrsqrt.f32 %v623_v11  ;;  %v609_v0 = vmul.f32 0.0078125, %v584_v15 }
  0xcf   : > { %v2441_v22 = vpop.eup %2440  ;;  %536 = vst [vmem:[#allocation2 + $0x30] sm:$0xff] %v528_v18  ;;  %v520_v23 = vmul.f32 %v2932_v4, %v498_v25  ;;  %v626_v13 = vadd.f32 1e-06, %v610_v12 }
  0xd0   : > { %v2443_v26 = vpop.eup %2442  ;;  %v652_v28 = vmul.f32 %v2441_v22, %v2819_v32  ;;  %v625_v27 = vadd.f32 1e-06, %v609_v0  ;;  %v590_v1 = vpop.xlane.xlu1 %589 }
  0xd1   : > { %v588_v30 = vpop.xlane.xlu0 %587  ;;  %v529_v31 = vpack.c.bf16 %v521_v19, %v520_v23  ;;  %v651_v29 = vmul.f32 %v2443_v26, %v2824_v33  ;;  %2452 = vrsqrt.f32 %v626_v13  ;;  %v612_v34 = vmul.f32 0.0078125, %v590_v1 }
  0xd2   : > { %v674_v2 = vmul.f32 %v2932_v4, %v652_v28  ;;  %2454 = vrsqrt.f32 %v625_v27  ;;  %v611_v16 = vmul.f32 0.0078125, %v588_v30 }
  0xd3   : > { %v2445_v35 = vpop.eup %2444  ;;  %537 = vst [vmem:[#allocation2 + $0x38] sm:$0xff] %v529_v31  ;;  %v673_v38 = vmul.f32 %v2932_v4, %v651_v29  ;;  %v628_v5 = vadd.f32 1e-06, %v612_v34 }
  0xd4   : > { %v2447_v39 = vpop.eup %2446  ;;  %v654_v32 = vmul.f32 %v2445_v35, %v2833_v36  ;;  %v627_v17 = vadd.f32 1e-06, %v611_v16  ;;  %v594_v42 = vpop.xlane.xlu1 %593 }
  0xd5   : > { %v592_v43 = vpop.xlane.xlu0 %591  ;;  %v689_v46 = vpack.c.bf16 %v674_v2, %v673_v38  ;;  %v653_v33 = vmul.f32 %v2447_v39, %v2838_v37  ;;  %2456 = vrsqrt.f32 %v628_v5  ;;  %v614_v47 = vmul.f32 0.0078125, %v594_v42 }
  0xd6   : > { %v676_v50 = vmul.f32 %v2932_v4, %v654_v32  ;;  %2458 = vrsqrt.f32 %v627_v17  ;;  %v613_v51 = vmul.f32 0.0078125, %v592_v43 }
  0xd7   : > { %v2449_v54 = vpop.eup %2448  ;;  %697 = vst [vmem:[#allocation3] sm:$0xff] %v689_v46  ;;  %v675_v20 = vmul.f32 %v2932_v4, %v653_v33  ;;  %v630_v55 = vadd.f32 1e-06, %v614_v47 }
  0xd8   : > { %v2451_v58 = vpop.eup %2450  ;;  %v656_v36 = vmul.f32 %v2449_v54, %v2847_v40  ;;  %v629_v8 = vadd.f32 1e-06, %v613_v51  ;;  %v598_v59 = vpop.xlane.xlu1 %597 }
  0xd9   : > { %v596_v21 = vpop.xlane.xlu0 %595  ;;  %v690_v62 = vpack.c.bf16 %v676_v50, %v675_v20  ;;  %v655_v37 = vmul.f32 %v2451_v58, %v2852_v41  ;;  %2460 = vrsqrt.f32 %v630_v55  ;;  %v616_v63 = vmul.f32 0.0078125, %v598_v59 }
  0xda   : > { %v678_v3 = vmul.f32 %v2932_v4, %v656_v36  ;;  %2462 = vrsqrt.f32 %v629_v8  ;;  %v615_v9 = vmul.f32 0.0078125, %v596_v21 }
  0xdb   : > { %v2453_v6 = vpop.eup %2452  ;;  %698 = vst [vmem:[#allocation3 + $0x8] sm:$0xff] %v690_v62  ;;  %v677_v7 = vmul.f32 %v2932_v4, %v655_v37  ;;  %v632_v10 = vadd.f32 1e-06, %v616_v63 }
  0xdc   : > { %v2455_v24 = vpop.eup %2454  ;;  %v658_v40 = vmul.f32 %v2453_v6, %v2861_v44  ;;  %v631_v11 = vadd.f32 1e-06, %v615_v9  ;;  %v602_v14 = vpop.xlane.xlu1 %601 }
  0xdd   : > { %v600_v15 = vpop.xlane.xlu0 %599  ;;  %v691_v18 = vpack.c.bf16 %v678_v3, %v677_v7  ;;  %v657_v41 = vmul.f32 %v2455_v24, %v2866_v45  ;;  %2464 = vrsqrt.f32 %v632_v10  ;;  %v618_v25 = vmul.f32 0.0078125, %v602_v14 }
  0xde   : > { %v680_v12 = vmul.f32 %v2932_v4, %v658_v40  ;;  %2466 = vrsqrt.f32 %v631_v11  ;;  %v617_v19 = vmul.f32 0.0078125, %v600_v15 }
  0xdf   : > { %v2457_v0 = vpop.eup %2456  ;;  %699 = vst [vmem:[#allocation3 + $0x10] sm:$0xff] %v691_v18  ;;  %v679_v22 = vmul.f32 %v2932_v4, %v657_v41  ;;  %v634_v23 = vadd.f32 1e-06, %v618_v25 }
  0xe0   : > { %v2459_v13 = vpop.eup %2458  ;;  %v660_v44 = vmul.f32 %v2457_v0, %v2875_v48  ;;  %v633_v26 = vadd.f32 1e-06, %v617_v19 }
  0xe1   : > { %v692_v28 = vpack.c.bf16 %v680_v12, %v679_v22  ;;  %v659_v27 = vmul.f32 %v2459_v13, %v2880_v49  ;;  %2468 = vrsqrt.f32 %v634_v23 }
  0xe2   : > { %v682_v45 = vmul.f32 %v2932_v4, %v660_v44  ;;  %2470 = vrsqrt.f32 %v633_v26 }
  0xe3   : > { %v2461_v1 = vpop.eup %2460  ;;  %700 = vst [vmem:[#allocation3 + $0x18] sm:$0xff] %v692_v28  ;;  %v681_v30 = vmul.f32 %v2932_v4, %v659_v27 }
  0xe4   : > { %v2463_v31 = vpop.eup %2462  ;;  %v662_v29 = vmul.f32 %v2461_v1, %v2889_v52 }
  0xe5   : > { %v693_v34 = vpack.c.bf16 %v682_v45, %v681_v30  ;;  %v661_v2 = vmul.f32 %v2463_v31, %v2894_v53 }
  0xe6   : > { %v684_v48 = vmul.f32 %v2932_v4, %v662_v29 }
  0xe7   : > { %v2465_v16 = vpop.eup %2464  ;;  %701 = vst [vmem:[#allocation3 + $0x20] sm:$0xff] %v693_v34  ;;  %v683_v49 = vmul.f32 %v2932_v4, %v661_v2 }
  0xe8   : > { %v2467_v35 = vpop.eup %2466  ;;  %v664_v38 = vmul.f32 %v2465_v16, %v2903_v56 }
  0xe9   : > { %v694_v5 = vpack.c.bf16 %v684_v48, %v683_v49  ;;  %v663_v39 = vmul.f32 %v2467_v35, %v2908_v57 }
  0xea   : > { %v686_v32 = vmul.f32 %v2932_v4, %v664_v38 }
  0xeb   : > { %v2469_v17 = vpop.eup %2468  ;;  %702 = vst [vmem:[#allocation3 + $0x28] sm:$0xff] %v694_v5  ;;  %v685_v52 = vmul.f32 %v2932_v4, %v663_v39 }
  0xec   : > { %v2471_v42 = vpop.eup %2470  ;;  %v666_v53 = vmul.f32 %v2469_v17, %v2917_v60 }
  0xed   : > { %v695_v43 = vpack.c.bf16 %v686_v32, %v685_v52  ;;  %v665_v46 = vmul.f32 %v2471_v42, %v2922_v61 }
  0xee   : > { %v688_v33 = vmul.f32 %v2932_v4, %v666_v53 }
  0xef   : > { %703 = vst [vmem:[#allocation3 + $0x30] sm:$0xff] %v695_v43  ;;  %v687_v56 = vmul.f32 %v2932_v4, %v665_v46 }
  0xf1   : > { %v696_v47 = vpack.c.bf16 %v688_v33, %v687_v56 }
  0xf3   : > { %704 = vst [vmem:[#allocation3 + $0x38] sm:$0xff] %v696_v47 }
  0xf4 PF: > { %v2472_v57 = vld [vmem:[%s2691_s14] sm:$0xff]   ;;  %v2473_v60 = vld [vmem:[%s2691_s14 + $0x8] sm:$0xff]   ;;  %v2474_v61 = vld [vmem:[%s2691_s14 + $0x10] sm:$0xff]   ;;  %vm1240_vm0 = vcmask 261120   ;;  %p2071_p6 = scmp.ne.s32.totalorder %s2606_s24, 3 }
  0xf5   : > { %2202 = vmatprep.subr.bf16.mxu1 %v2472_v57  ;;  %v2475_v4 = vld [vmem:[%s2691_s14 + $0x18] sm:$0xff]   ;;  %v3001_v50 = vld [vmem:[#allocation3] sm:$0xff]  ;;  %v2481_v54 = vld [vmem:[%s2686_s11 + $0x8] sm:$0xff]  }
  0xf6   : > { %2203 = vmatpush3.bf16.msra.mxu1 %v2472_v57  ;;  %2218 = vmatprep.mubr.bf16.mxu1 %v3001_v50  ;;  %v2480_v51 = vld [vmem:[%s2686_s11] sm:$0xff]   ;;  %v2482_v55 = vld [vmem:[%s2686_s11 + $0x10] sm:$0xff]   ;;  %v2477_v58 = vld [vmem:[%s2691_s14 + $0x28] sm:$0xff]  }
  0xf7   : > { %2204 = vmatprep.subr.bf16.mxu1 %v2473_v60  ;;  %v2476_v20 = vld [vmem:[%s2691_s14 + $0x20] sm:$0xff]   ;;  %2170 = vmatprep.subr.bf16.mxu0 %v2480_v51  ;;  %v2483_v36 = vld [vmem:[%s2686_s11 + $0x18] sm:$0xff]   ;;  %v2478_v59 = vld [vmem:[%s2691_s14 + $0x30] sm:$0xff]  }
  0xf8   : > { %2171 = vmatpush3.bf16.msra.mxu0 %v2480_v51  ;;  %v773_v8 = vld [vmem:[#allocation2] sm:$0xff]  ;;  %v2479_v62 = vld [vmem:[%s2691_s14 + $0x38] sm:$0xff]   ;;  %v2485_v37 = vld [vmem:[%s2686_s11 + $0x28] sm:$0xff]  }
  0xf9   : > { %2172 = vmatprep.subr.bf16.mxu0 %v2481_v54  ;;  %2186 = vmatprep.mubr.bf16.mxu0 %v773_v8  ;;  %v2484_v21 = vld [vmem:[%s2686_s11 + $0x20] sm:$0xff]   ;;  %v2486_v63 = vld [vmem:[%s2686_s11 + $0x30] sm:$0xff]   ;;  %v3015_v3 = vld [vmem:[#allocation3 + $0x8] sm:$0xff] }
  0xfa   : > { %2205 = vmatpush3.bf16.msra.mxu1 %v2473_v60  ;;  %v3017_v9 = vld [vmem:[#allocation3 + $0x10] sm:$0xff]  ;;  %v2487_v6 = vld [vmem:[%s2686_s11 + $0x38] sm:$0xff]   ;;  %v3024_v10 = vld [vmem:[#allocation3 + $0x20] sm:$0xff] }
  0xfb   : > { %2206 = vmatprep.subr.bf16.mxu1 %v2474_v61  ;;  %v3022_v7 = vld [vmem:[#allocation3 + $0x18] sm:$0xff]  ;;  %v774_v24 = vld [vmem:[#allocation2 + $0x8] sm:$0xff]  ;;  %v775_v40 = vld [vmem:[#allocation2 + $0x10] sm:$0xff] }
  0xfc   : > { %2173 = vmatpush3.bf16.msra.mxu0 %v2481_v54  ;;  %v3028_v11 = vld [vmem:[#allocation3 + $0x28] sm:$0xff]  ;;  %v3030_v14 = vld [vmem:[#allocation3 + $0x30] sm:$0xff]  ;;  %v776_v15 = vld [vmem:[#allocation2 + $0x18] sm:$0xff] }
  0xfd   : > { %2174 = vmatprep.subr.bf16.mxu0 %v2482_v55  ;;  %v777_v18 = vld [vmem:[#allocation2 + $0x20] sm:$0xff]  ;;  %v3034_v41 = vld [vmem:[#allocation3 + $0x38] sm:$0xff]  ;;  %v778_v25 = vld [vmem:[#allocation2 + $0x28] sm:$0xff] }
  0xfe   : > { %2207 = vmatpush3.bf16.msra.mxu1 %v2474_v61  ;;  %v779_v12 = vld [vmem:[#allocation2 + $0x30] sm:$0xff]  ;;  %v780_v19 = vld [vmem:[#allocation2 + $0x38] sm:$0xff] }
  0xff   : > { %2208 = vmatprep.subr.bf16.mxu1 %v2475_v4 }
 0x100   : > { %2175 = vmatpush3.bf16.msra.mxu0 %v2482_v55 }
 0x101   : > { %2176 = vmatprep.subr.bf16.mxu0 %v2483_v36 }
 0x102   : > { %2209 = vmatpush3.bf16.msra.mxu1 %v2475_v4 }
 0x103   : > { %2210 = vmatprep.subr.bf16.mxu1 %v2476_v20 }
 0x104   : > { %2177 = vmatpush3.bf16.msra.mxu0 %v2483_v36 }
 0x105   : > { %2178 = vmatprep.subr.bf16.mxu0 %v2484_v21 }
 0x106   : > { %2211 = vmatpush3.bf16.msra.mxu1 %v2476_v20 }
 0x107   : > { %2212 = vmatprep.subr.bf16.mxu1 %v2477_v58 }
 0x108   : > { %2179 = vmatpush3.bf16.msra.mxu0 %v2484_v21 }
 0x109   : > { %2180 = vmatprep.subr.bf16.mxu0 %v2485_v37 }
 0x10a   : > { %2213 = vmatpush3.bf16.msra.mxu1 %v2477_v58 }
 0x10b   : > { %2214 = vmatprep.subr.bf16.mxu1 %v2478_v59 }
 0x10c   : > { %2181 = vmatpush3.bf16.msra.mxu0 %v2485_v37 }
 0x10d   : > { %2182 = vmatprep.subr.bf16.mxu0 %v2486_v63 }
 0x10e   : > { %2215 = vmatpush3.bf16.msra.mxu1 %v2478_v59 }
 0x10f   : > { %2216 = vmatprep.subr.bf16.mxu1 %v2479_v62 }
 0x110   : > { %2183 = vmatpush3.bf16.msra.mxu0 %v2486_v63 }
 0x111   : > { %2184 = vmatprep.subr.bf16.mxu0 %v2487_v6 }
 0x112   : > { %2217 = vmatpush3.bf16.msra.mxu1 %v2479_v62 }
 0x114   : > { %2185 = vmatpush3.bf16.msra.mxu0 %v2487_v6 }
 0x115   : > { %2219 = vmatmul.mubr.bf16.vlgmr.msra.gmra.mrb[0].mxu1 %v3015_v3 }
 0x116   : > { %2222 = vmatprep.mubr.bf16.mxu1 %v3017_v9 }
 0x117   : > { %2187 = vmatmul.mubr.bf16.vlgmr.msra.gmra.mrb[0].mxu0 %v774_v24 }
 0x118   : > { %2190 = vmatprep.mubr.bf16.mxu0 %v775_v40 }
 0x11d   : > { %2223 = vmatmul.mubr.bf16.gmra.mrb[4].mxu1 %v3022_v7 }
 0x11e   : > { %2226 = vmatprep.mubr.bf16.mxu1 %v3024_v10 }
 0x11f   : > { %2191 = vmatmul.mubr.bf16.gmra.mrb[4].mxu0 %v776_v15 }
 0x120   : > { %2194 = vmatprep.mubr.bf16.mxu0 %v777_v18 }
 0x125   : > { %2227 = vmatmul.mubr.bf16.gmra.mrb[8].mxu1 %v3028_v11 }
 0x126   : > { %2230 = vmatprep.mubr.bf16.mxu1 %v3030_v14 }
 0x127   : > { %2195 = vmatmul.mubr.bf16.gmra.mrb[8].mxu0 %v778_v25 }
 0x128   : > { %2198 = vmatprep.mubr.bf16.mxu0 %v779_v12 }
 0x12d   : > { %2231 = vmatmul.mubr.bf16.gmra.mrb[12].mxu1 %v3034_v41 }
 0x12f   : > { %2199 = vmatmul.mubr.bf16.gmra.mrb[12].mxu0 %v780_v19  ;;  %v2488_v19 = vld [vmem:[%s2696_s17] sm:$0xff]  }
 0x130   : > { %2250 = vmatprep.mubr.bf16.mxu0 %v3001_v50  ;;  %2234 = vmatprep.subr.bf16.mxu0 %v2488_v19 }
 0x131   : > { %2235 = vmatpush3.bf16.msra.mxu0 %v2488_v19 }
 0x1e8   : > { %v2220_v0 = vpop.f32.mrb[0].mxu1 }
 0x1e9   : > { %v1016_v22 = vpop.f32.mrb[1].mxu1 }
 0x1ea   : > { %v2221_v23 = vpop.f32.mrb[2].mxu1  ;;  %v2188_v30 = vpop.f32.mrb[0].mxu0 }
 0x1eb   : > { %v1233_v13 = vpack.c.bf16 %v2221_v23, %v2220_v0  ;;  %v1019_v44 = vpop.f32.mrb[3].mxu1  ;;  %v863_v34 = vpop.f32.mrb[1].mxu0  ;;  %v2489_v0 = vld [vmem:[%s2696_s17 + $0x8] sm:$0xff]   ;;  %v2491_v23 = vld [vmem:[%s2696_s17 + $0x18] sm:$0xff]  }
 0x1ec   : > { %v1232_v26 = vpack.c.bf16 %v1019_v44, %v1016_v22  ;;  %v2189_v48 = vpop.f32.mrb[2].mxu0  ;;  %2236 = vmatprep.subr.bf16.mxu0 %v2489_v0  ;;  %v2490_v22 = vld [vmem:[%s2696_s17 + $0x10] sm:$0xff]   ;;  %v2493_v44 = vld [vmem:[%s2696_s17 + $0x28] sm:$0xff]  }
 0x1ed   : > { %v1225_v16 = vpack.c.bf16 %v2189_v48, %v2188_v30  ;;  %v866_v49 = vpop.f32.mrb[3].mxu0  ;;  %v1269_v35 = vsel %vm1240_vm0, %v1233_v13, 0  ;;  %2237 = vmatpush3.bf16.msra.mxu0 %v2489_v0 }
 0x1ee   : > { %v1266_v28 = vsel %vm1240_vm0, %v1232_v26, 0  ;;  %2366 = vmatprep.subr.msk.bf16.mxu1 %vm1240_vm0, %v1232_v26  ;;  %v1224_v38 = vpack.c.bf16 %v866_v49, %v863_v34  ;;  %2238 = vmatprep.subr.bf16.mxu0 %v2490_v22  ;;  %v2494_v26 = vld [vmem:[%s2696_s17 + $0x30] sm:$0xff]  }
 0x1ef   : > { %2267 = vmatpush3.bf16.xpose.msra.mxu1 %v1266_v28  ;;  %v2495_v28 = vld [vmem:[%s2696_s17 + $0x38] sm:$0xff]  }
 0x1f0   : > { %2367 = vmatprep.subr.msk.bf16.mxu1 %vm1240_vm0, %v1233_v13  ;;  %v2224_v27 = vpop.f32.mrb[4].mxu1  ;;  %2282 = vmatprep.mubr.msk.bf16.mxu1 %vm1240_vm0, %v1224_v38  ;;  %v2492_v13 = vld [vmem:[%s2696_s17 + $0x20] sm:$0xff]  }
 0x1f1   : > { %v1032_v45 = vpop.f32.mrb[5].mxu1  ;;  %2239 = vmatpush3.bf16.msra.mxu0 %v2490_v22 }
 0x1f2   : > { %v2225_v1 = vpop.f32.mrb[6].mxu1  ;;  %v2192_v17 = vpop.f32.mrb[4].mxu0  ;;  %2240 = vmatprep.subr.bf16.mxu0 %v2491_v23 }
 0x1f3   : > { %v1235_v31 = vpack.c.bf16 %v2225_v1, %v2224_v27  ;;  %v1035_v29 = vpop.f32.mrb[7].mxu1  ;;  %v879_v53 = vpop.f32.mrb[5].mxu0 }
 0x1f4   : > { %v1234_v2 = vpack.c.bf16 %v1035_v29, %v1032_v45  ;;  %v2193_v46 = vpop.f32.mrb[6].mxu0 }
 0x1f5   : > { %v1227_v33 = vpack.c.bf16 %v2193_v46, %v2192_v17  ;;  %v882_v56 = vpop.f32.mrb[7].mxu0  ;;  %v1275_v59 = vsel %vm1240_vm0, %v1235_v31, 0  ;;  %2241 = vmatpush3.bf16.msra.mxu0 %v2491_v23 }
 0x1f6   : > { %v1272_v47 = vsel %vm1240_vm0, %v1234_v2, 0  ;;  %v1226_v57 = vpack.c.bf16 %v882_v56, %v879_v53  ;;  %2242 = vmatprep.subr.bf16.mxu0 %v2492_v13 }
 0x1f7   : > { %2269 = vmatpush3.bf16.xpose.msra.mxu1 %v1269_v35 }
 0x1f8   : > { %2368 = vmatprep.subr.msk.bf16.mxu1 %vm1240_vm0, %v1234_v2  ;;  %v2228_v5 = vpop.f32.mrb[8].mxu1 }
 0x1f9   : > { %v1048_v39 = vpop.f32.mrb[9].mxu1  ;;  %2243 = vmatpush3.bf16.msra.mxu0 %v2492_v13 }
 0x1fa   : > { %v2229_v32 = vpop.f32.mrb[10].mxu1  ;;  %v2196_v50 = vpop.f32.mrb[8].mxu0  ;;  %2244 = vmatprep.subr.bf16.mxu0 %v2493_v44 }
 0x1fb   : > { %v1237_v52 = vpack.c.bf16 %v2229_v32, %v2228_v5  ;;  %v1051_v42 = vpop.f32.mrb[11].mxu1  ;;  %v895_v20 = vpop.f32.mrb[9].mxu0 }
 0x1fc   : > { %v1236_v43 = vpack.c.bf16 %v1051_v42, %v1048_v39  ;;  %v2197_v58 = vpop.f32.mrb[10].mxu0 }
 0x1fd   : > { %v1229_v36 = vpack.c.bf16 %v2197_v58, %v2196_v50  ;;  %v898_v8 = vpop.f32.mrb[11].mxu0  ;;  %v1281_v18 = vsel %vm1240_vm0, %v1237_v52, 0  ;;  %2245 = vmatpush3.bf16.msra.mxu0 %v2493_v44 }
 0x1fe   : > { %v1228_v21 = vpack.c.bf16 %v898_v8, %v895_v20  ;;  %v1278_v40 = vsel %vm1240_vm0, %v1236_v43, 0  ;;  %2246 = vmatprep.subr.bf16.mxu0 %v2494_v26 }
 0x1ff   : > { %2271 = vmatpush3.bf16.xpose.msra.mxu1 %v1272_v47 }
 0x200   : > { %2369 = vmatprep.subr.msk.bf16.mxu1 %vm1240_vm0, %v1235_v31  ;;  %v2232_v60 = vpop.f32.mrb[12].mxu1 }
 0x201   : > { %v1064_v61 = vpop.f32.mrb[13].mxu1  ;;  %2247 = vmatpush3.bf16.msra.mxu0 %v2494_v26 }
 0x202   : > { %v2233_v4 = vpop.f32.mrb[14].mxu1  ;;  %v2200_v62 = vpop.f32.mrb[12].mxu0  ;;  %2248 = vmatprep.subr.bf16.mxu0 %v2495_v28 }
 0x203   : > { %v1239_v51 = vpack.c.bf16 %v2233_v4, %v2232_v60  ;;  %v1067_v54 = vpop.f32.mrb[15].mxu1  ;;  %v911_v37 = vpop.f32.mrb[13].mxu0 }
 0x204   : > { %v1238_v55 = vpack.c.bf16 %v1067_v54, %v1064_v61  ;;  %v2201_v63 = vpop.f32.mrb[14].mxu0 }
 0x205   : > { %v1231_v6 = vpack.c.bf16 %v2201_v63, %v2200_v62  ;;  %v914_v24 = vpop.f32.mrb[15].mxu0  ;;  %v1287_v12 = vsel %vm1240_vm0, %v1239_v51, 0  ;;  %2249 = vmatpush3.bf16.msra.mxu0 %v2495_v28 }
 0x206   : > { %v1230_v15 = vpack.c.bf16 %v914_v24, %v911_v37  ;;  %v1284_v25 = vsel %vm1240_vm0, %v1238_v55, 0 }
 0x207   : > { %2273 = vmatpush3.bf16.xpose.msra.mxu1 %v1275_v59 }
 0x208   : > { %2370 = vmatprep.subr.msk.bf16.mxu1 %vm1240_vm0, %v1236_v43  ;;  %2251 = vmatmul.mubr.bf16.vlgmr.msra.gmra.mrb[16].mxu0 %v3015_v3 }
 0x209   : > { %2254 = vmatprep.mubr.bf16.mxu0 %v3017_v9 }
 0x20f   : > { %2275 = vmatpush3.bf16.xpose.msra.mxu1 %v1278_v40 }
 0x210   : > { %2371 = vmatprep.subr.msk.bf16.mxu1 %vm1240_vm0, %v1237_v52  ;;  %2255 = vmatmul.mubr.bf16.gmra.mrb[20].mxu0 %v3022_v7 }
 0x211   : > { %2258 = vmatprep.mubr.bf16.mxu0 %v3024_v10 }
 0x217   : > { %2277 = vmatpush3.bf16.xpose.msra.mxu1 %v1281_v18 }
 0x218   : > { %2372 = vmatprep.subr.msk.bf16.mxu1 %vm1240_vm0, %v1238_v55  ;;  %2259 = vmatmul.mubr.bf16.gmra.mrb[24].mxu0 %v3028_v11 }
 0x219   : > { %2262 = vmatprep.mubr.bf16.mxu0 %v3030_v14 }
 0x21f   : > { %2279 = vmatpush3.bf16.xpose.msra.mxu1 %v1284_v25 }
 0x220   : > { %2373 = vmatprep.subr.msk.bf16.mxu1 %vm1240_vm0, %v1239_v51  ;;  %2263 = vmatmul.mubr.bf16.gmra.mrb[28].mxu0 %v3034_v41 }
 0x227   : > { %2281 = vmatpush3.bf16.xpose.msra.mxu1 %v1287_v12 }
 0x22e   : > { %2283 = vmatmul.mubr.msk.bf16.vlgmr.msra.gmra.mrb[16].mxu1 %vm1240_vm0, %v1225_v16 }
 0x22f   : > { %2286 = vmatprep.mubr.msk.bf16.mxu1 %vm1240_vm0, %v1226_v57 }
 0x236   : > { %2287 = vmatmul.mubr.msk.bf16.gmra.mrb[20].mxu1 %vm1240_vm0, %v1227_v33 }
 0x237   : > { %2290 = vmatprep.mubr.msk.bf16.mxu1 %vm1240_vm0, %v1228_v21 }
 0x23e   : > { %2291 = vmatmul.mubr.msk.bf16.gmra.mrb[24].mxu1 %vm1240_vm0, %v1229_v36 }
 0x23f   : > { %2294 = vmatprep.mubr.msk.bf16.mxu1 %vm1240_vm0, %v1230_v15 }
 0x246   : > { %2295 = vmatmul.mubr.msk.bf16.gmra.mrb[28].mxu1 %vm1240_vm0, %v1231_v6 }
 0x2db   : > { %v2252_v53 = vpop.f32.mrb[16].mxu0 }
 0x2dc   : > { %v1161_v46 = vpop.f32.mrb[17].mxu0 }
 0x2dd   : > { %v2253_v47 = vpop.f32.mrb[18].mxu0 }
 0x2de   : > { %v1539_v60 = vpack.c.bf16 %v2253_v47, %v2252_v53  ;;  %v1164_v61 = vpop.f32.mrb[19].mxu0 }
 0x2df   : > { %v1538_v50 = vpack.c.bf16 %v1164_v61, %v1161_v46 }
 0x2e1   : > { %2298 = vmatprep.subr.bf16.mxu0 %v1538_v50  ;;  %2350 = vmatprep.subr.bf16.mxu1 %v1538_v50 }
 0x2e2   : > { %2299 = vmatpush3.bf16.msra.mxu0 %v1538_v50  ;;  %2358 = vmatpush3.bf16.msra.mxu1 %v1538_v50 }
 0x2e3   : > { %v2256_v8 = vpop.f32.mrb[20].mxu0  ;;  %2300 = vmatprep.subr.bf16.mxu0 %v1539_v60  ;;  %2351 = vmatprep.subr.bf16.mxu1 %v1539_v60 }
 0x2e4   : > { %v1177_v37 = vpop.f32.mrb[21].mxu0 }
 0x2e5   : > { %v2257_v6 = vpop.f32.mrb[22].mxu0 }
 0x2e6   : > { %v1541_v15 = vpack.c.bf16 %v2257_v6, %v2256_v8  ;;  %v1180_v18 = vpop.f32.mrb[23].mxu0  ;;  %2301 = vmatpush3.bf16.msra.mxu0 %v1539_v60  ;;  %2359 = vmatpush3.bf16.msra.mxu1 %v1539_v60 }
 0x2e7   : > { %v1540_v19 = vpack.c.bf16 %v1180_v18, %v1177_v37 }
 0x2e9   : > { %2302 = vmatprep.subr.bf16.mxu0 %v1540_v19  ;;  %2352 = vmatprep.subr.bf16.mxu1 %v1540_v19 }
 0x2ea   : > { %2303 = vmatpush3.bf16.msra.mxu0 %v1540_v19  ;;  %2360 = vmatpush3.bf16.msra.mxu1 %v1540_v19 }
 0x2eb   : > { %2304 = vmatprep.subr.bf16.mxu0 %v1541_v15  ;;  %2353 = vmatprep.subr.bf16.mxu1 %v1541_v15 }
 0x2ee   : > { %2305 = vmatpush3.bf16.msra.mxu0 %v1541_v15  ;;  %2361 = vmatpush3.bf16.msra.mxu1 %v1541_v15 }
 0x301   : > { %v2284_v27 = vpop.f32.mrb[16].mxu1 }
 0x302   : > { %1390 = vmax.xlane.f32.xlu1 %v2284_v27  ;;  %v1323_v45 = vpop.f32.mrb[17].mxu1 }
 0x303   : > { %1386 = vmax.xlane.f32.xlu0 %v1323_v45  ;;  %v2285_v1 = vpop.f32.mrb[18].mxu1 }
 0x304   : > { %v1326_v30 = vpop.f32.mrb[19].mxu1 }
 0x306   : > { %1392 = vmax.xlane.f32.xlu1 %v2285_v1 }
 0x307   : > { %1388 = vmax.xlane.f32.xlu0 %v1326_v30 }
 0x309   : > { %v3077_v3 = vpop.f32.mrb[20].mxu1 }
 0x30a   : > { %v1339_v9 = vpop.f32.mrb[21].mxu1 }
 0x30b   : > { %1394 = vmax.xlane.f32.xlu0 %v1339_v9  ;;  %v3079_v7 = vpop.f32.mrb[22].mxu1 }
 0x30c   : > { %v1342_v10 = vpop.f32.mrb[23].mxu1 }
 0x30d   : > { %1396 = vmax.xlane.f32.xlu1 %v1342_v10 }
 0x30f   : > { %1398 = vmax.xlane.f32.xlu0 %v3077_v3 }
 0x311   : > { %1400 = vmax.xlane.f32.xlu1 %v3079_v7  ;;  %v3083_v11 = vpop.f32.mrb[24].mxu1 }
 0x312   : > { %v3085_v14 = vpop.f32.mrb[25].mxu1 }
 0x313   : > { %1402 = vmax.xlane.f32.xlu0 %v3085_v14  ;;  %v3088_v41 = vpop.f32.mrb[26].mxu1 }
 0x314   : > { %v3090_v31 = vpop.f32.mrb[27].mxu1 }
 0x315   : > { %1404 = vmax.xlane.f32.xlu1 %v3090_v31 }
 0x317   : > { %1406 = vmax.xlane.f32.xlu0 %v3083_v11 }
 0x319   : > { %1408 = vmax.xlane.f32.xlu1 %v3088_v41  ;;  %v3095_v29 = vpop.f32.mrb[28].mxu1 }
 0x31a   : > { %v3097_v34 = vpop.f32.mrb[29].mxu1 }
 0x31b   : > { %1410 = vmax.xlane.f32.xlu0 %v3097_v34  ;;  %v3100_v2 = vpop.f32.mrb[30].mxu1 }
 0x31c   : > { %v3102_v48 = vpop.f32.mrb[31].mxu1 }
 0x31d   : > { %1412 = vmax.xlane.f32.xlu1 %v3102_v48 }
 0x31f   : > { %1414 = vmax.xlane.f32.xlu0 %v3095_v29 }
 0x321   : > { %1416 = vmax.xlane.f32.xlu1 %v3100_v2 }
 0x38f   : > { %v1391_v16 = vpop.xlane.xlu1 %1390 }
 0x390   : > { %v1420_v49 = vsub.f32 %v2284_v27, %v1391_v16  ;;  %v1387_v35 = vpop.xlane.xlu0 %1386 }
 0x391   : > { %v1418_v38 = vsub.f32 %v1323_v45, %v1387_v35  ;;  %v2260_v45 = vpop.f32.mrb[24].mxu0 }
 0x392   : > { %v1438_v32 = vmul.f32 1.442695, %v1420_v49 }
 0x393   : > { %v1434_v5 = vmul.f32 1.442695, %v1418_v38  ;;  %v1393_v39 = vpop.xlane.xlu1 %1392 }
 0x394   : > { %v1421_v17 = vsub.f32 %v2285_v1, %v1393_v39  ;;  %v1389_v52 = vpop.xlane.xlu0 %1388 }
 0x395   : > { %2498 = vpow2.f32 %v1434_v5  ;;  %v1419_v42 = vsub.f32 %v1326_v30, %v1389_v52 }
 0x396   : > { %2500 = vpow2.f32 %v1438_v32  ;;  %v1440_v33 = vmul.f32 1.442695, %v1421_v17 }
 0x397   : > { %v1436_v43 = vmul.f32 1.442695, %v1419_v42 }
 0x398   : > { %v1395_v56 = vpop.xlane.xlu0 %1394 }
 0x399   : > { %2502 = vpow2.f32 %v1436_v43  ;;  %v1422_v57 = vsub.f32 %v1339_v9, %v1395_v56  ;;  %v1193_v9 = vpop.f32.mrb[25].mxu0 }
 0x39a   : > { %v1397_v4 = vpop.xlane.xlu1 %1396  ;;  %2504 = vpow2.f32 %v1440_v33 }
 0x39b   : > { %v1442_v51 = vmul.f32 1.442695, %v1422_v57  ;;  %v1423_v54 = vsub.f32 %v1342_v10, %v1397_v4  ;;  %v2261_v10 = vpop.f32.mrb[26].mxu0 }
 0x39c   : > { %v1399_v20 = vpop.xlane.xlu0 %1398  ;;  %v1196_v16 = vpop.f32.mrb[27].mxu0 }
 0x39d   : > { %2506 = vpow2.f32 %v1442_v51  ;;  %v1444_v55 = vmul.f32 1.442695, %v1423_v54  ;;  %v1424_v58 = vsub.f32 %v3077_v3, %v1399_v20  ;;  %v2264_v53 = vpop.f32.mrb[28].mxu0 }
 0x39e   : > { %v1401_v36 = vpop.xlane.xlu1 %1400  ;;  %v1209_v33 = vpop.f32.mrb[29].mxu0 }
 0x39f   : > { %v3108_v59 = vpop.eup %2498  ;;  %v1446_v21 = vmul.f32 1.442695, %v1424_v58  ;;  %v1425_v62 = vsub.f32 %v3079_v7, %v1401_v36  ;;  %2508 = vpow2.f32 %v1444_v55  ;;  %v2496_v55 = vld [vmem:[%s2701_s20] sm:$0xff]  }
 0x3a0   : > { %v1403_v63 = vpop.xlane.xlu0 %1402  ;;  %1466 = vadd.xlane.f32.xlu0 %v3108_v59  ;;  %v3113_v25 = vpop.eup %2500 }
 0x3a1   : > { %2510 = vpow2.f32 %v1446_v21  ;;  %v1448_v24 = vmul.f32 1.442695, %v1425_v62  ;;  %v1426_v40 = vsub.f32 %v3085_v14, %v1403_v63 }
 0x3a2   : > { %v1405_v12 = vpop.xlane.xlu1 %1404 }
 0x3a3   : > { %v3115_v0 = vpop.eup %2502  ;;  %v1450_v22 = vmul.f32 1.442695, %v1426_v40  ;;  %v1427_v23 = vsub.f32 %v3090_v31, %v1405_v12  ;;  %2512 = vpow2.f32 %v1448_v24  ;;  %v1543_v31 = vpack.c.bf16 %v2261_v10, %v2260_v45 }
 0x3a4   : > { %v1407_v13 = vpop.xlane.xlu0 %1406  ;;  %1470 = vadd.xlane.f32.xlu0 %v3113_v25  ;;  %1468 = vadd.xlane.f32.xlu1 %v3115_v0  ;;  %v3121_v28 = vpop.eup %2504 }
 0x3a5   : > { %2514 = vpow2.f32 %v1450_v22  ;;  %v1452_v44 = vmul.f32 1.442695, %v1427_v23  ;;  %v1428_v26 = vsub.f32 %v3083_v11, %v1407_v13 }
 0x3a6   : > { %v1409_v27 = vpop.xlane.xlu1 %1408 }
 0x3a7   : > { %v3123_v1 = vpop.eup %2506  ;;  %v1454_v30 = vmul.f32 1.442695, %v1428_v26  ;;  %v1429_v3 = vsub.f32 %v3088_v41, %v1409_v27  ;;  %2516 = vpow2.f32 %v1452_v44  ;;  %v1542_v41 = vpack.c.bf16 %v1196_v16, %v1193_v9 }
 0x3a8   : > { %1474 = vadd.xlane.f32.xlu0 %v3123_v1  ;;  %v1411_v7 = vpop.xlane.xlu0 %1410  ;;  %1472 = vadd.xlane.f32.xlu1 %v3121_v28 }
 0x3a9   : > { %2518 = vpow2.f32 %v1454_v30  ;;  %v1456_v11 = vmul.f32 1.442695, %v1429_v3  ;;  %v1430_v14 = vsub.f32 %v3097_v34, %v1411_v7  ;;  %v3129_v49 = vpop.eup %2508  ;;  %2306 = vmatprep.subr.bf16.mxu0 %v1542_v41  ;;  %2354 = vmatprep.subr.bf16.mxu1 %v1542_v41  ;;  %v2497_v3 = vld [vmem:[%s2701_s20 + $0x8] sm:$0xff]  }
 0x3aa   : > { %v1413_v35 = vpop.xlane.xlu1 %1412  ;;  %2307 = vmatpush3.bf16.msra.mxu0 %v1542_v41  ;;  %2362 = vmatpush3.bf16.msra.mxu1 %v1542_v41 }
 0x3ab   : > { %v3131_v38 = vpop.eup %2510  ;;  %v1458_v5 = vmul.f32 1.442695, %v1430_v14  ;;  %v1431_v39 = vsub.f32 %v3102_v48, %v1413_v35  ;;  %2520 = vpow2.f32 %v1456_v11  ;;  %2308 = vmatprep.subr.bf16.mxu0 %v1543_v31  ;;  %2355 = vmatprep.subr.bf16.mxu1 %v1543_v31 }
 0x3ac   : > { %1478 = vadd.xlane.f32.xlu0 %v3131_v38  ;;  %v1415_v32 = vpop.xlane.xlu0 %1414  ;;  %1476 = vadd.xlane.f32.xlu1 %v3129_v49 }
 0x3ad   : > { %2522 = vpow2.f32 %v1458_v5  ;;  %v1460_v34 = vmul.f32 1.442695, %v1431_v39  ;;  %v1432_v17 = vsub.f32 %v3095_v29, %v1415_v32  ;;  %v3137_v52 = vpop.eup %2512  ;;  %v2265_v29 = vpop.f32.mrb[30].mxu0 }
 0x3ae   : > { %v1417_v42 = vpop.xlane.xlu1 %1416  ;;  %v1545_v47 = vpack.c.bf16 %v2265_v29, %v2264_v53  ;;  %2309 = vmatpush3.bf16.msra.mxu0 %v1543_v31  ;;  %2363 = vmatpush3.bf16.msra.mxu1 %v1543_v31  ;;  %v1212_v61 = vpop.f32.mrb[31].mxu0 }
 0x3af   : > { %v3139_v43 = vpop.eup %2514  ;;  %v1462_v48 = vmul.f32 1.442695, %v1432_v17  ;;  %v1433_v46 = vsub.f32 %v3100_v2, %v1417_v42  ;;  %2524 = vpow2.f32 %v1460_v34  ;;  %v1544_v2 = vpack.c.bf16 %v1212_v61, %v1209_v33 }
 0x3b0   : > { %1482 = vadd.xlane.f32.xlu0 %v3139_v43  ;;  %1480 = vadd.xlane.f32.xlu1 %v3137_v52 }
 0x3b1   : > { %2526 = vpow2.f32 %v1462_v48  ;;  %v1464_v56 = vmul.f32 1.442695, %v1433_v46  ;;  %v3144_v57 = vpop.eup %2516  ;;  %2310 = vmatprep.subr.bf16.mxu0 %v1544_v2  ;;  %2356 = vmatprep.subr.bf16.mxu1 %v1544_v2 }
 0x3b2   : > { %2311 = vmatpush3.bf16.msra.mxu0 %v1544_v2  ;;  %2364 = vmatpush3.bf16.msra.mxu1 %v1544_v2 }
 0x3b3   : > { %v3146_v60 = vpop.eup %2518  ;;  %2528 = vpow2.f32 %v1464_v56  ;;  %2312 = vmatprep.subr.bf16.mxu0 %v1545_v47  ;;  %2357 = vmatprep.subr.bf16.mxu1 %v1545_v47 }
 0x3b4   : > { %1486 = vadd.xlane.f32.xlu0 %v3146_v60  ;;  %1484 = vadd.xlane.f32.xlu1 %v3144_v57 }
 0x3b5   : > { %v3150_v4 = vpop.eup %2520 }
 0x3b6   : > { %2313 = vmatpush3.bf16.msra.mxu0 %v1545_v47  ;;  %2365 = vmatpush3.bf16.msra.mxu1 %v1545_v47 }
 0x3b7   : > { %v3152_v50 = vpop.eup %2522  ;;  %2330 = vmatprep.subr.bf16.mxu0 %v2496_v55 }
 0x3b8   : > { %1490 = vadd.xlane.f32.xlu0 %v3152_v50  ;;  %1488 = vadd.xlane.f32.xlu1 %v3150_v4 }
 0x3b9   : > { %v3156_v51 = vpop.eup %2524 }
 0x3bb   : > { %v3158_v54 = vpop.eup %2526 }
 0x3bc   : > { %1494 = vadd.xlane.f32.xlu0 %v3158_v54  ;;  %1492 = vadd.xlane.f32.xlu1 %v3156_v51 }
 0x3bd   : > { %v3162_v20 = vpop.eup %2528 }
 0x3c0   : > { %1496 = vadd.xlane.f32.xlu1 %v3162_v20 }
 0x42d   : > { %v1467_v58 = vpop.xlane.xlu0 %1466 }
 0x42e   : > { %2530 = vrcp.f32 %v1467_v58 }
 0x431   : > { %v1471_v36 = vpop.xlane.xlu0 %1470  ;;  %v1469_v8 = vpop.xlane.xlu1 %1468 }
 0x432   : > { %2532 = vrcp.f32 %v1469_v8 }
 0x433   : > { %2534 = vrcp.f32 %v1471_v36 }
 0x435   : > { %v1475_v21 = vpop.xlane.xlu0 %1474  ;;  %v1473_v62 = vpop.xlane.xlu1 %1472 }
 0x436   : > { %2536 = vrcp.f32 %v1473_v62 }
 0x437   : > { %2538 = vrcp.f32 %v1475_v21 }
 0x438   : > { %v2531_v6 = vpop.eup %2530 }
 0x439   : > { %v1479_v37 = vpop.xlane.xlu0 %1478  ;;  %v1477_v63 = vpop.xlane.xlu1 %1476  ;;  %v1514_v18 = vmul.f32 %v2531_v6, %v3108_v59 }
 0x43a   : > { %2540 = vrcp.f32 %v1477_v63 }
 0x43b   : > { %2542 = vrcp.f32 %v1479_v37 }
 0x43c   : > { %v2533_v24 = vpop.eup %2532 }
 0x43d   : > { %v1483_v40 = vpop.xlane.xlu0 %1482  ;;  %v1481_v15 = vpop.xlane.xlu1 %1480  ;;  %v1515_v12 = vmul.f32 %v2533_v24, %v3115_v0 }
 0x43e   : > { %v2535_v19 = vpop.eup %2534  ;;  %2544 = vrcp.f32 %v1481_v15 }
 0x43f   : > { %v1530_v22 = vpack.c.bf16 %v1515_v12, %v1514_v18  ;;  %2546 = vrcp.f32 %v1483_v40  ;;  %v1516_v26 = vmul.f32 %v2535_v19, %v3113_v25 }
 0x440   : > { %v2537_v23 = vpop.eup %2536 }
 0x441   : > { %v1487_v13 = vpop.xlane.xlu0 %1486  ;;  %v1485_v44 = vpop.xlane.xlu1 %1484  ;;  %v1517_v27 = vmul.f32 %v2537_v23, %v3121_v28  ;;  %2314 = vmatprep.mubr.bf16.mxu0 %v1530_v22 }
 0x442   : > { %v2539_v45 = vpop.eup %2538  ;;  %2548 = vrcp.f32 %v1485_v44  ;;  %v1645_v44 = vld [vmem:[#allocation4 + $0x10] sm:$0xff] }
 0x443   : > { %v1531_v30 = vpack.c.bf16 %v1517_v27, %v1516_v26  ;;  %2550 = vrcp.f32 %v1487_v13  ;;  %v1518_v7 = vmul.f32 %v2539_v45, %v3123_v1  ;;  %v1643_v26 = vld [vmem:[#allocation4] sm:$0xff]  ;;  %v1646_v45 = vld [vmem:[#allocation4 + $0x18] sm:$0xff] }
 0x444   : > { %v2541_v9 = vpop.eup %2540 }
 0x445   : > { %v1491_v59 = vpop.xlane.xlu0 %1490  ;;  %v1489_v0 = vpop.xlane.xlu1 %1488  ;;  %2315 = vmatmul.mubr.bf16.vlgmr.msra.gmra.mrb[32].mxu0 %v1531_v30  ;;  %v1519_v10 = vmul.f32 %v2541_v9, %v3129_v49  ;;  %v1644_v9 = vld [vmem:[#allocation4 + $0x8] sm:$0xff] }
 0x446   : > { %v2543_v11 = vpop.eup %2542  ;;  %2552 = vrcp.f32 %v1489_v0  ;;  %2331 = vmatpush3.bf16.msra.mxu0 %v2496_v55 }
 0x447   : > { %v1532_v25 = vpack.c.bf16 %v1519_v10, %v1518_v7  ;;  %2332 = vmatprep.subr.bf16.mxu0 %v2497_v3  ;;  %2554 = vrcp.f32 %v1491_v59  ;;  %v1520_v16 = vmul.f32 %v2543_v11, %v3131_v38 }
 0x448   : > { %v2545_v28 = vpop.eup %2544 }
 0x449   : > { %v1495_v14 = vpop.xlane.xlu0 %1494  ;;  %v1493_v31 = vpop.xlane.xlu1 %1492  ;;  %2318 = vmatprep.mubr.bf16.mxu0 %v1532_v25  ;;  %v1521_v35 = vmul.f32 %v2545_v28, %v3137_v52  ;;  %v1649_v25 = vld [vmem:[#allocation4 + $0x30] sm:$0xff]  ;;  %v1647_v28 = vld [vmem:[#allocation4 + $0x20] sm:$0xff] }
 0x44a   : > { %v2547_v41 = vpop.eup %2546  ;;  %2556 = vrcp.f32 %v1493_v31  ;;  %2333 = vmatpush3.bf16.msra.mxu0 %v2497_v3  ;;  %v1650_v31 = vld [vmem:[#allocation4 + $0x38] sm:$0xff] }
 0x44b   : > { %2558 = vrcp.f32 %v1495_v14  ;;  %v1533_v1 = vpack.c.bf16 %v1521_v35, %v1520_v16  ;;  %v1522_v39 = vmul.f32 %v2547_v41, %v3139_v43  ;;  %v1648_v41 = vld [vmem:[#allocation4 + $0x28] sm:$0xff] }
 0x44c   : > { %v2549_v49 = vpop.eup %2548 }
 0x44d   : > { %v1497_v5 = vpop.xlane.xlu1 %1496  ;;  %2319 = vmatmul.mubr.bf16.gmra.mrb[36].mxu0 %v1533_v1  ;;  %v1523_v32 = vmul.f32 %v2549_v49, %v3144_v57  ;;  %v2551_v34 = vpop.eup %2550 }
 0x44e   : > { %2560 = vrcp.f32 %v1497_v5  ;;  %v1524_v38 = vmul.f32 %v2551_v34, %v3146_v60  ;;  %v1653_v34 = vld [vmem:[#allocation4 + $0x50] sm:$0xff] }
 0x44f   : > { %v1534_v17 = vpack.c.bf16 %v1523_v32, %v1522_v39 }
 0x450   : > { %v2553_v42 = vpop.eup %2552 }
 0x451   : > { %v1525_v52 = vmul.f32 %v2553_v42, %v3150_v4  ;;  %2322 = vmatprep.mubr.bf16.mxu1 %v1534_v17  ;;  %v2555_v53 = vpop.eup %2554  ;;  %v1651_v17 = vld [vmem:[#allocation4 + $0x40] sm:$0xff] }
 0x452   : > { %v1526_v29 = vmul.f32 %v2555_v53, %v3152_v50 }
 0x453   : > { %v1535_v48 = vpack.c.bf16 %v1525_v52, %v1524_v38  ;;  %v1654_v38 = vld [vmem:[#allocation4 + $0x58] sm:$0xff] }
 0x454   : > { %v2557_v46 = vpop.eup %2556 }
 0x455   : > { %v2559_v33 = vpop.eup %2558  ;;  %2323 = vmatmul.mubr.bf16.vlgmr.msra.gmra.mrb[32].mxu1 %v1535_v48  ;;  %v1527_v56 = vmul.f32 %v2557_v46, %v3156_v51  ;;  %v1652_v48 = vld [vmem:[#allocation4 + $0x48] sm:$0xff] }
 0x456   : > { %v1528_v57 = vmul.f32 %v2559_v33, %v3158_v54 }
 0x457   : > { %v1536_v47 = vpack.c.bf16 %v1527_v56, %v1526_v29 }
 0x458   : > { %v2561_v43 = vpop.eup %2560 }
 0x459   : > { %v1529_v61 = vmul.f32 %v2561_v43, %v3162_v20  ;;  %2326 = vmatprep.mubr.bf16.mxu1 %v1536_v47  ;;  %v1657_v47 = vld [vmem:[#allocation4 + $0x70] sm:$0xff] }
 0x45b   : > { %v1537_v60 = vpack.c.bf16 %v1529_v61, %v1528_v57  ;;  %v1655_v57 = vld [vmem:[#allocation4 + $0x60] sm:$0xff] }
 0x45d   : > { %2327 = vmatmul.mubr.bf16.gmra.mrb[36].mxu1 %v1537_v60  ;;  %v1658_v60 = vld [vmem:[#allocation4 + $0x78] sm:$0xff] }
 0x518   : > { %v2316_v2 = vpop.f32.mrb[32].mxu0 }
 0x519   : > { %v1580_v4 = vpop.f32.mrb[33].mxu0 }
 0x51a   : > { %v2317_v55 = vpop.f32.mrb[34].mxu0 }
 0x51b   : > { %v1660_v58 = vpack.c.bf16 %v2317_v55, %v2316_v2  ;;  %v1583_v36 = vpop.f32.mrb[35].mxu0  ;;  %v1656_v55 = vld [vmem:[#allocation4 + $0x68] sm:$0xff] }
 0x51c   : > { %v1659_v8 = vpack.c.bf16 %v1583_v36, %v1580_v4 }
 0x51e   : > { %2334 = vmatprep.mubr.msk.bf16.mxu0 %vm1240_vm0, %v1659_v8 }
 0x51f   : > { %2335 = vmatmul.mubr.msk.bf16.vlgmr.msra.gmra.mrb[40].mxu0 %vm1240_vm0, %v1660_v58 }
 0x520   : > { %v2320_v50 = vpop.f32.mrb[36].mxu0 }
 0x521   : > { %v1596_v51 = vpop.f32.mrb[37].mxu0 }
 0x522   : > { %v2321_v21 = vpop.f32.mrb[38].mxu0 }
 0x523   : > { %v1662_v62 = vpack.c.bf16 %v2321_v21, %v2320_v50  ;;  %v1599_v54 = vpop.f32.mrb[39].mxu0  ;;  %v1836_v21 = vld [vmem:[%s3277_s0] sm:$0xff] (!%p2071_p6) }
 0x524   : > { %v1661_v37 = vpack.c.bf16 %v1599_v54, %v1596_v51  ;;  %v1837_v54 = vld [vmem:[%s3277_s0 + $0x8] sm:$0xff] (!%p2071_p6) }
 0x526   : > { %2338 = vmatprep.mubr.msk.bf16.mxu0 %vm1240_vm0, %v1661_v37 }
 0x527   : > { %2339 = vmatmul.mubr.msk.bf16.gmra.mrb[44].mxu0 %vm1240_vm0, %v1662_v62 }
 0x528   : > { %v2324_v20 = vpop.f32.mrb[32].mxu1 }
 0x529   : > { %v1612_v63 = vpop.f32.mrb[33].mxu1 }
 0x52a   : > { %v2325_v6 = vpop.f32.mrb[34].mxu1 }
 0x52b   : > { %v1664_v24 = vpack.c.bf16 %v2325_v6, %v2324_v20  ;;  %v1615_v40 = vpop.f32.mrb[35].mxu1 }
 0x52c   : > { %v1663_v15 = vpack.c.bf16 %v1615_v40, %v1612_v63  ;;  %v1838_v63 = vld [vmem:[%s3277_s0 + $0x10] sm:$0xff] (!%p2071_p6) }
 0x52e   : > { %2342 = vmatprep.mubr.msk.bf16.mxu0 %vm1240_vm0, %v1663_v15  ;;  %v1839_v15 = vld [vmem:[%s3277_s0 + $0x18] sm:$0xff] (!%p2071_p6) }
 0x52f   : > { %2343 = vmatmul.mubr.msk.bf16.gmra.mrb[48].mxu0 %vm1240_vm0, %v1664_v24 }
 0x530   : > { %v2328_v18 = vpop.f32.mrb[36].mxu1 }
 0x531   : > { %v1628_v12 = vpop.f32.mrb[37].mxu1 }
 0x532   : > { %v2329_v19 = vpop.f32.mrb[38].mxu1 }
 0x533   : > { %v1666_v22 = vpack.c.bf16 %v2329_v19, %v2328_v18  ;;  %v1631_v23 = vpop.f32.mrb[39].mxu1 }
 0x534   : > { %v1665_v13 = vpack.c.bf16 %v1631_v23, %v1628_v12  ;;  %v1840_v12 = vld [vmem:[%s3277_s0 + $0x20] sm:$0xff] (!%p2071_p6)  ;;  %v1841_v23 = vld [vmem:[%s3277_s0 + $0x28] sm:$0xff] (!%p2071_p6) }
 0x536   : > { %2346 = vmatprep.mubr.msk.bf16.mxu0 %vm1240_vm0, %v1665_v13 }
 0x537   : > { %2347 = vmatmul.mubr.msk.bf16.gmra.mrb[52].mxu0 %vm1240_vm0, %v1666_v22 }
 0x5f2   : > { %v2336_v27 = vpop.f32.mrb[40].mxu0 }
 0x5f3   : > { %v1802_v30 = vadd.f32 %v2336_v27, %v1645_v44  ;;  %v1737_v3 = vpop.f32.mrb[41].mxu0  ;;  %v1842_v27 = vld [vmem:[%s3277_s0 + $0x30] sm:$0xff] (!%p2071_p6) }
 0x5f4   : > { %v1800_v59 = vadd.f32 %v1737_v3, %v1643_v26  ;;  %v2337_v0 = vpop.f32.mrb[42].mxu0 }
 0x5f5   : > { %1818 = vst [vmem:[#allocation4 + $0x10] sm:$0xff] %v1802_v30  ;;  %v1803_v7 = vadd.f32 %v2337_v0, %v1646_v45  ;;  %v1740_v10 = vpop.f32.mrb[43].mxu0  ;;  %v1843_v30 = vld [vmem:[%s3277_s0 + $0x38] sm:$0xff] (!%p2071_p6) }
 0x5f6   : > { %1816 = vst [vmem:[#allocation4] sm:$0xff] %v1800_v59  ;;  %v1801_v11 = vadd.f32 %v1740_v10, %v1644_v9  ;;  %v1844_v59 = vld [vmem:[%s3277_s0 + $0x40] sm:$0xff] (!%p2071_p6) }
 0x5f7   : > { %1819 = vst [vmem:[#allocation4 + $0x18] sm:$0xff] %v1803_v7 }
 0x5f8   : > { %1817 = vst [vmem:[#allocation4 + $0x8] sm:$0xff] %v1801_v11  ;;  %v1845_v11 = vld [vmem:[%s3277_s0 + $0x48] sm:$0xff] (!%p2071_p6) }
 0x5fa   : > { %v2340_v14 = vpop.f32.mrb[44].mxu0 }
 0x5fb   : > { %v1806_v16 = vadd.f32 %v2340_v14, %v1649_v25  ;;  %v1753_v35 = vpop.f32.mrb[45].mxu0 }
 0x5fc   : > { %v1804_v1 = vadd.f32 %v1753_v35, %v1647_v28  ;;  %v2341_v49 = vpop.f32.mrb[46].mxu0  ;;  %v1854_v6 = vld [vmem:[#allocation4 + $0x10] sm:$0xff] (!%p2071_p6) }
 0x5fd   : > { %1822 = vst [vmem:[#allocation4 + $0x30] sm:$0xff] %v1806_v16  ;;  %v1807_v5 = vadd.f32 %v2341_v49, %v1650_v31  ;;  %v1756_v39 = vpop.f32.mrb[47].mxu0  ;;  %v1852_v62 = vld [vmem:[#allocation4] sm:$0xff] (!%p2071_p6)  ;;  %v1870_v40 = vadd.f32 (!%p2071_p6), %v1854_v6, %v1838_v63  ;;  %v1846_v28 = vld [vmem:[%s3277_s0 + $0x50] sm:$0xff] (!%p2071_p6)  ;;  %v1847_v16 = vld [vmem:[%s3277_s0 + $0x58] sm:$0xff] (!%p2071_p6) }
 0x5fe   : > { %1820 = vst [vmem:[#allocation4 + $0x20] sm:$0xff] %v1804_v1  ;;  %v1805_v32 = vadd.f32 %v1756_v39, %v1648_v41  ;;  %v1868_v37 = vadd.f32 (!%p2071_p6), %v1852_v62, %v1836_v21  ;;  %v1855_v18 = vld [vmem:[#allocation4 + $0x18] sm:$0xff] (!%p2071_p6)  ;;  %v1848_v49 = vld [vmem:[%s3277_s0 + $0x60] sm:$0xff] (!%p2071_p6)  ;;  %v1849_v39 = vld [vmem:[%s3277_s0 + $0x68] sm:$0xff] (!%p2071_p6) }
 0x5ff   : > { %1823 = vst [vmem:[#allocation4 + $0x38] sm:$0xff] %v1807_v5  ;;  %v1853_v20 = vld [vmem:[#allocation4 + $0x8] sm:$0xff] (!%p2071_p6)  ;;  %v1871_v19 = vadd.f32 (!%p2071_p6), %v1855_v18, %v1839_v15  ;;  %1886 = vst [vmem:[#allocation5 + $0x10] sm:$0xff] (!%p2071_p6), %v1870_v40 }
 0x600   : > { %1821 = vst [vmem:[#allocation4 + $0x28] sm:$0xff] %v1805_v32  ;;  %v1869_v24 = vadd.f32 (!%p2071_p6), %v1853_v20, %v1837_v54  ;;  %1884 = vst [vmem:[#allocation5] sm:$0xff] (!%p2071_p6), %v1868_v37 }
 0x601   : > { %1887 = vst [vmem:[#allocation5 + $0x18] sm:$0xff] (!%p2071_p6), %v1871_v19 }
 0x602   : > { %v2344_v42 = vpop.f32.mrb[48].mxu0  ;;  %1885 = vst [vmem:[#allocation5 + $0x8] sm:$0xff] (!%p2071_p6), %v1869_v24 }
 0x603   : > { %v1810_v52 = vadd.f32 %v2344_v42, %v1653_v34  ;;  %v1769_v53 = vpop.f32.mrb[49].mxu0 }
 0x604   : > { %v1808_v46 = vadd.f32 %v1769_v53, %v1651_v17  ;;  %v2345_v33 = vpop.f32.mrb[50].mxu0  ;;  %v1858_v45 = vld [vmem:[#allocation4 + $0x30] sm:$0xff] (!%p2071_p6)  ;;  %v1851_v53 = vld [vmem:[%s3277_s0 + $0x78] sm:$0xff] (!%p2071_p6) }
 0x605   : > { %1826 = vst [vmem:[#allocation4 + $0x50] sm:$0xff] %v1810_v52  ;;  %v1811_v29 = vadd.f32 %v2345_v33, %v1654_v38  ;;  %v1772_v56 = vpop.f32.mrb[51].mxu0  ;;  %v1856_v22 = vld [vmem:[#allocation4 + $0x20] sm:$0xff] (!%p2071_p6)  ;;  %v1874_v3 = vadd.f32 (!%p2071_p6), %v1858_v45, %v1842_v27  ;;  %v1850_v17 = vld [vmem:[%s3277_s0 + $0x70] sm:$0xff] (!%p2071_p6) }
 0x606   : > { %1824 = vst [vmem:[#allocation4 + $0x40] sm:$0xff] %v1808_v46  ;;  %v1809_v43 = vadd.f32 %v1772_v56, %v1652_v48  ;;  %v1872_v44 = vadd.f32 (!%p2071_p6), %v1856_v22, %v1840_v12  ;;  %v1859_v9 = vld [vmem:[#allocation4 + $0x38] sm:$0xff] (!%p2071_p6) }
 0x607   : > { %1827 = vst [vmem:[#allocation4 + $0x58] sm:$0xff] %v1811_v29  ;;  %v1857_v13 = vld [vmem:[#allocation4 + $0x28] sm:$0xff] (!%p2071_p6)  ;;  %v1875_v7 = vadd.f32 (!%p2071_p6), %v1859_v9, %v1843_v30  ;;  %1890 = vst [vmem:[#allocation5 + $0x30] sm:$0xff] (!%p2071_p6), %v1874_v3 }
 0x608   : > { %1825 = vst [vmem:[#allocation4 + $0x48] sm:$0xff] %v1809_v43  ;;  %v1873_v26 = vadd.f32 (!%p2071_p6), %v1857_v13, %v1841_v23  ;;  %1888 = vst [vmem:[#allocation5 + $0x20] sm:$0xff] (!%p2071_p6), %v1872_v44 }
 0x609   : > { %1891 = vst [vmem:[#allocation5 + $0x38] sm:$0xff] (!%p2071_p6), %v1875_v7 }
 0x60a   : > { %v2348_v61 = vpop.f32.mrb[52].mxu0  ;;  %1835 = sbr.rel (%p2071_p6) target bundleno = 1563 (0x61b), region = 56  ;;  %1889 = vst [vmem:[#allocation5 + $0x28] sm:$0xff] (!%p2071_p6), %v1873_v26 }
 0x60b   : > { %v1814_v2 = vadd.f32 %v2348_v61, %v1657_v47  ;;  %v1785_v4 = vpop.f32.mrb[53].mxu0 }
 0x60c   : > { %v1812_v58 = vadd.f32 %v1785_v4, %v1655_v57  ;;  %v2349_v36 = vpop.f32.mrb[54].mxu0  ;;  %v1862_v31 = vld [vmem:[#allocation4 + $0x50] sm:$0xff] (!%p2071_p6) }
 0x60d   : > { %1830 = vst [vmem:[#allocation4 + $0x70] sm:$0xff] %v1814_v2  ;;  %v1815_v8 = vadd.f32 %v2349_v36, %v1658_v60  ;;  %v1788_v50 = vpop.f32.mrb[55].mxu0  ;;  %v1860_v0 = vld [vmem:[#allocation4 + $0x40] sm:$0xff] (!%p2071_p6)  ;;  %v1878_v41 = vadd.f32 (!%p2071_p6), %v1862_v31, %v1846_v28 }
 0x60e   : > { %1828 = vst [vmem:[#allocation4 + $0x60] sm:$0xff] %v1812_v58  ;;  %v1813_v51 = vadd.f32 %v1788_v50, %v1656_v55  ;;  %v1876_v10 = vadd.f32 (!%p2071_p6), %v1860_v0, %v1844_v59  ;;  %v1863_v35 = vld [vmem:[#allocation4 + $0x58] sm:$0xff] (!%p2071_p6) }
 0x60f   : > { %1831 = vst [vmem:[#allocation4 + $0x78] sm:$0xff] %v1815_v8  ;;  %v1861_v25 = vld [vmem:[#allocation4 + $0x48] sm:$0xff] (!%p2071_p6)  ;;  %v1879_v1 = vadd.f32 (!%p2071_p6), %v1863_v35, %v1847_v16  ;;  %1894 = vst [vmem:[#allocation5 + $0x50] sm:$0xff] (!%p2071_p6), %v1878_v41 }
 0x610   : > { %1829 = vst [vmem:[#allocation4 + $0x68] sm:$0xff] %v1813_v51  ;;  %v1877_v14 = vadd.f32 (!%p2071_p6), %v1861_v25, %v1845_v11  ;;  %1892 = vst [vmem:[#allocation5 + $0x40] sm:$0xff] (!%p2071_p6), %v1876_v10 }
 0x611   : > { %1895 = vst [vmem:[#allocation5 + $0x58] sm:$0xff] %v1879_v1 }
 0x612   : > { %1893 = vst [vmem:[#allocation5 + $0x48] sm:$0xff] %v1877_v14 }
 0x614   : > { %v1866_v42 = vld [vmem:[#allocation4 + $0x70] sm:$0xff] }
 0x615   : > { %v1864_v5 = vld [vmem:[#allocation4 + $0x60] sm:$0xff]  ;;  %v1882_v52 = vadd.f32 %v1866_v42, %v1850_v17 }
 0x616   : > { %v1880_v32 = vadd.f32 %v1864_v5, %v1848_v49  ;;  %v1867_v48 = vld [vmem:[#allocation4 + $0x78] sm:$0xff] }
 0x617   : > { %v1865_v34 = vld [vmem:[#allocation4 + $0x68] sm:$0xff]  ;;  %v1883_v46 = vadd.f32 %v1867_v48, %v1851_v53  ;;  %1898 = vst [vmem:[#allocation5 + $0x70] sm:$0xff] %v1882_v52 }
 0x618   : > { %v1881_v38 = vadd.f32 %v1865_v34, %v1849_v39  ;;  %1896 = vst [vmem:[#allocation5 + $0x60] sm:$0xff] %v1880_v32 }
 0x619   : > { %1899 = vst [vmem:[#allocation5 + $0x78] sm:$0xff] %v1883_v46 }
 0x61a   : > { %1897 = vst [vmem:[#allocation5 + $0x68] sm:$0xff] %v1881_v38 }
 0x61b PF: > { %p3242_p7 = scmp.eq.s32.totalorder %s2013_s27, 3  ;;  %s2617_s9 = smov [#allocation5]  }
 0x61c   : > { %s1909_s8 = sshll.u32 %s2617_s9, 4  ;;  %s1910_s8 = int_to_ptr.vmem [resolvable:$true] %s1909_s8 }
 0x61d   : > { %s2562_s10 = scalar_lea.vmem %s1910_s8, 2048  ;;  %p2569_p11 = scmp.lt.s32.totalorder %s1910_s8, %s1910_s8 }
 0x61e   : > { %p2563_p8 = scmp.ne.s32.totalorder %s1910_s8, %s2562_s10  ;;  %p2570_p12 = scmp.lt.s32.totalorder %s2562_s10, %s2562_s10 }
 0x620   : > { %p2564_p9 = pnand %p2563_p8, %p3242_p7  ;;  %p2571_p13 = por %p2570_p12, %p2569_p11 }
 0x622   : > { %p2565_p10 = pneg %p2564_p9 }
 0x624   : > { %p2572_p0 = pnand %p2571_p13, %p2565_p10 }
 0x626   : > { %2575 = shalt.err (!%p2572_p0)
}
 0x627   : > { %s2576_s27 = scalar_lea.hbm %s3284_s7, 2048 }
 0x628   : > { %p2577_p1 = scmp.ne.s32.totalorder %s3284_s7, %s2576_s27  ;;  %p2582_p4 = scmp.lt.u32.totalorder %s2576_s27, %s3284_s7 }
 0x62a   : > { %p2578_p2 = pnand %p2577_p1, %p3242_p7 }
 0x62c   : > { %p2579_p3 = pneg %p2578_p2 }
 0x62e   : > { %p2584_p5 = pnand %p2582_p4, %p2579_p3 }
 0x630   : > { %2587 = shalt.err (!%p2584_p5)
}
 0x631   : > { %s2618_s15 = smov 128   ;;  %s2619_s16 = smov 8  }
 0x632   : > { %2375 = dma.vmem_to_hbm [thread:$0]  (%p3242_p7), %s1910_s8, 2048, %s3284_s7, [#allocation6], %s2618_s15, %s2618_s15, %s2619_s16  }
 0x633   : > { %2601 = dma.done.wait (%p3242_p7), [#allocation6], 2048  }
 0x634   : > { %2603 = vsyncadd (%p3242_p7), [#allocation6], 4294965248 }
 0x635 PF: > { %s18_s26 = sadd.s32 1, %s2614_s26   ;;  %s3286_s24 = smov %s2610_s25 }
 0x636   : > { %p15_p6 = scmp.ge.s32.totalorder %s18_s26, 6   ;;  %s3287_s25 = smov %s3289_s28 }
 0x638   :  { %17 = sbr.rel (!%p15_p6) target bundleno = 2 (0x2), region = 96 }
 0x63f   :  { %1925 = vsyncpa [#allocation6], 1 }
 0x640   :  { %1927 = vsyncpa [#allocation6 + $0x1], 1 }

</bundles_post_ra>
